<compile_context>
chip_gen: v7x
topology: tpu7x:2x2x1
jax: 0.10.0
libtpu: 0.0.40
codegen_flags: <defaults>
</compile_context>

<pallas_src>
import functools

import jax
import jax.numpy as jnp
from jax.experimental import pallas as pl
from jax.experimental.pallas import tpu as pltpu

TILE_ROWS = 256   # row (sublane-axis) tile; multiple of 8, well under VMEM budgets
LANE = 128        # TPU lane width

_COMPILER_PARAMS = pltpu.CompilerParams(
    dimension_semantics=("parallel",),     # independent row tiles -> megacore sharding
    vmem_limit_bytes=32 * 1024 * 1024,     # explicit budget; fits v5e/v6e/v7x
)


def _round_up(x, m):
    return (x + m - 1) // m * m


def _gelu(x):
    # TODO(synk): PyTorch nn.GELU default is the exact erf form; tanh approximation used here.
    c = 0.7978845608028654  # sqrt(2/pi)
    return 0.5 * x * (1.0 + jnp.tanh(c * (x + 0.044715 * x * x * x)))


# ----------------------------------------------------------------------------
# Pallas kernels
# ----------------------------------------------------------------------------
def _linear_kernel(x_ref, w_ref, b_ref, o_ref):
    """o[r, e] = sum_d x[r, d] * w[d, e] + b[e]   (row-tiled nn.Linear, bf16 MXU)."""
    x = x_ref[...].astype(jnp.bfloat16)
    w = w_ref[...].astype(jnp.bfloat16)
    y = jnp.dot(x, w, preferred_element_type=jnp.float32) + b_ref[...].astype(jnp.float32)
    o_ref[...] = y.astype(o_ref.dtype)


def _linear_rows(x2d, w, b):
    """x2d: [R, Din] -> [R, Dout], tiled over rows with a pipelined 1-D grid."""
    R, Din = x2d.shape
    Dout = w.shape[1]
    Rp = _round_up(R, TILE_ROWS)
    if Rp != R:
        x2d = jnp.pad(x2d, ((0, Rp - R), (0, 0)))
    out = pl.pallas_call(
        _linear_kernel,
        out_shape=jax.ShapeDtypeStruct((Rp, Dout), jnp.float32),
        grid=(Rp // TILE_ROWS,),
        in_specs=[
            pl.BlockSpec((TILE_ROWS, Din), lambda i: (i, 0)),
            pl.BlockSpec((Din, Dout), lambda i: (0, 0)),
            pl.BlockSpec((1, Dout), lambda i: (0, 0)),
        ],
        out_specs=pl.BlockSpec((TILE_ROWS, Dout), lambda i: (i, 0)),
        compiler_params=_COMPILER_PARAMS,
    )(x2d, w, b)
    return out[:R]


def _s4_block_epilogue_kernel(conv_ref, u_ref, dskip_ref, w_ref, b_ref,
                              g_ref, beta_ref, o_ref):
    """Fused per-row-tile S4Block epilogue (norm_strategy='post', p_dropout=0):
         x = conv + dskip * u            (S4Layer D-skip; conv from FFT path)
         x = GELU(x)                     (dropout is identity)
         x = x @ W + b                   (nn.Linear(d_model, d_model), bf16 MXU)
         x = LayerNorm(x)*gamma + beta   (f32 statistics)
         o = x + u                       (residual)
    """
    u = u_ref[...]                                        # [T, D] f32
    x = conv_ref[...] + u * dskip_ref[...]
    x = _gelu(x)
    y = jnp.dot(x.astype(jnp.bfloat16), w_ref[...].astype(jnp.bfloat16),
                preferred_element_type=jnp.float32) + b_ref[...].astype(jnp.float32)
    mu = jnp.mean(y, axis=-1, keepdims=True)
    var = jnp.mean((y - mu) ** 2, axis=-1, keepdims=True)
    y = (y - mu) * jax.lax.rsqrt(var + 1e-5)
    y = y * g_ref[...].astype(jnp.float32) + beta_ref[...].astype(jnp.float32)
    o_ref[...] = (y + u).astype(o_ref.dtype)


def _s4_block_epilogue(conv2d, u2d, dskip, w, b, gamma, beta):
    R, D = u2d.shape
    Rp = _round_up(R, TILE_ROWS)
    if Rp != R:
        conv2d = jnp.pad(conv2d, ((0, Rp - R), (0, 0)))
        u2d = jnp.pad(u2d, ((0, Rp - R), (0, 0)))
    out = pl.pallas_call(
        _s4_block_epilogue_kernel,
        out_shape=jax.ShapeDtypeStruct((Rp, D), jnp.float32),
        grid=(Rp // TILE_ROWS,),
        in_specs=[
            pl.BlockSpec((TILE_ROWS, D), lambda i: (i, 0)),   # conv
            pl.BlockSpec((TILE_ROWS, D), lambda i: (i, 0)),   # u (skip + residual)
            pl.BlockSpec((1, D), lambda i: (0, 0)),           # dskip
            pl.BlockSpec((D, D), lambda i: (0, 0)),           # W
            pl.BlockSpec((1, D), lambda i: (0, 0)),           # b
            pl.BlockSpec((1, D), lambda i: (0, 0)),           # gamma
            pl.BlockSpec((1, D), lambda i: (0, 0)),           # beta
        ],
        out_specs=pl.BlockSpec((TILE_ROWS, D), lambda i: (i, 0)),
        compiler_params=_COMPILER_PARAMS,
    )(conv2d, u2d, dskip, w, b, gamma, beta)
    return out[:R]


# ----------------------------------------------------------------------------
# S4 causal depthwise convolution (O(L log L), plain XLA)
# ----------------------------------------------------------------------------
def _causal_conv_fft(u, K):
    """conv[b, l, d] = sum_{s<=l} K[d, l-s] * u[b, s, d].

    TODO(synk): FFT has no Pallas TPU primitive; the convolution stays in XLA
    (reviewer-endorsed O(L log L) path), replacing the O(L^2) materialized
    Toeplitz/broadcast product of the previous version.
    """
    B, L, D = u.shape
    n = 2 * L
    uf = jnp.fft.rfft(u.astype(jnp.float32), n=n, axis=1)      # [B, n//2+1, D]
    kf = jnp.fft.rfft(K.T.astype(jnp.float32), n=n, axis=0)    # [n//2+1, D]
    y = jnp.fft.irfft(uf * kf[None, :, :], n=n, axis=1)[:, :L, :]
    return y.astype(jnp.float32)


# ----------------------------------------------------------------------------
# deterministic parameter setup (plain JAX glue)
# ----------------------------------------------------------------------------
def _make_ssm_kernel(key, d_model, n, l):
    """S4D-style diagonal SSM convolution kernel K[d, l] (real arithmetic).

    TODO(synk): stand-in for s4torch's HiPPO/bilinear parameterization; the
    convolution semantics (causal depthwise conv with K + D-skip) match.
    """
    k1, k2, k3 = jax.random.split(key, 3)
    dt = jnp.exp(jax.random.uniform(k1, (d_model, 1), minval=jnp.log(0.001),
                                    maxval=jnp.log(0.1)))                  # [D, 1]
    a_re = jnp.full((1, n), -0.5, dtype=jnp.float32)
    a_im = jnp.pi * jnp.arange(n, dtype=jnp.float32)[None, :]
    c_re = jax.random.normal(k2, (d_model, n), jnp.float32) * 0.5
    c_im = jax.random.normal(k3, (d_model, n), jnp.float32) * 0.5
    dtA_re = dt * a_re                                                     # [D, N]
    dtA_im = dt * a_im
    co_re = c_re * dt
    co_im = c_im * dt
    ell = jnp.arange(l, dtype=jnp.float32)[None, None, :]                  # [1, 1, L]
    mag = jnp.exp(dtA_re[:, :, None] * ell)                                # [D, N, L]
    ang = dtA_im[:, :, None] * ell
    pw_re = mag * jnp.cos(ang)
    pw_im = mag * jnp.sin(ang)
    K = 2.0 * jnp.sum(co_re[:, :, None] * pw_re - co_im[:, :, None] * pw_im, axis=1)
    return K.astype(jnp.float32)                                           # [D, L]


def make_params(key, d_input, d_model, d_output, n_blocks, n, l_max):
    assert d_model % LANE == 0, "d_model should be a multiple of 128 (lane width)"
    keys = jax.random.split(key, 2 + n_blocks)
    d_output_pad = _round_up(d_output, LANE)
    w_dec = jax.random.normal(keys[1], (d_model, d_output), jnp.float32) \
            / jnp.sqrt(jnp.float32(d_model))
    w_dec_pad = jnp.zeros((d_model, d_output_pad), jnp.float32).at[:, :d_output].set(w_dec)
    params = {
        "w_enc": (jax.random.normal(keys[0], (d_input, d_model), jnp.float32)
                  / jnp.sqrt(jnp.float32(d_input))).astype(jnp.bfloat16),
        "b_enc": jnp.zeros((1, d_model), jnp.float32),
        "w_dec": w_dec_pad.astype(jnp.bfloat16),            # lane-dense padded decoder weight
        "b_dec": jnp.zeros((1, d_output_pad), jnp.float32),
        "blocks": [],
    }
    for i in range(n_blocks):
        bk = jax.random.split(keys[2 + i], 3)
        K = _make_ssm_kernel(bk[0], d_model, n, l_max)                     # [D, L]
        params["blocks"].append(dict(
            K=K,
            dskip=jnp.ones((1, d_model), jnp.float32),                     # S4Layer D init = ones
            w=(jax.random.normal(bk[1], (d_model, d_model), jnp.float32)
               / jnp.sqrt(jnp.float32(d_model))).astype(jnp.bfloat16),
            b=jax.random.normal(bk[2], (1, d_model), jnp.float32) * 0.01,
            gamma=jnp.ones((1, d_model), jnp.float32),
            beta=jnp.zeros((1, d_model), jnp.float32),
        ))
    return params


# ----------------------------------------------------------------------------
# model forward (encoder -> S4 blocks -> decoder)
# ----------------------------------------------------------------------------
def s4_model_forward(params, u, d_output, collapse=False):
    B, L, d_input = u.shape
    d_model = params["w_enc"].shape[1]
    rows = B * L

    # StandardEncoder (Linear) -- activations carried as 2-D [rows, D]
    y = _linear_rows(u.reshape(rows, d_input), params["w_enc"], params["b_enc"])

    for blk in params["blocks"]:
        conv = _causal_conv_fft(y.reshape(B, L, d_model), blk["K"])        # [B, L, D]
        y = _s4_block_epilogue(conv.reshape(rows, d_model), y,
                               blk["dskip"], blk["w"], blk["b"],
                               blk["gamma"], blk["beta"])                  # [rows, D]

    if collapse:
        ym = jnp.mean(y.reshape(B, L, d_model), axis=1)                    # [B, D]
        out = _linear_rows(ym, params["w_dec"], params["b_dec"])
        return out[:, :d_output]
    out = _linear_rows(y, params["w_dec"], params["b_dec"])                # [rows, 128]
    return out[:, :d_output].reshape(B, L, d_output)


if __name__ == "__main__":
    B, L = 2, 256
    d_input, d_model, d_output = 4, 128, 6
    n_blocks, n = 2, 8

    key = jax.random.PRNGKey(0)
    pkey, xkey = jax.random.split(key)
    params = make_params(pkey, d_input, d_model, d_output, n_blocks, n, L)
    u = jax.random.normal(xkey, (B, L, d_input), jnp.float32)   # [BATCH, SEQ_LEN, D_INPUT]

    fwd = jax.jit(functools.partial(s4_model_forward, d_output=d_output, collapse=False))
    y = jax.block_until_ready(fwd(params, u))                   # [BATCH, SEQ_LEN, D_OUTPUT]

    assert y.shape == (B, L, d_output), y.shape
    assert bool(jnp.all(jnp.isfinite(y)))
    print("KERNEL_OK")
</pallas_src>

<mosaic_0001>
module attributes {stable_mosaic.version = 11 : i64} {
  func.func @_linear_kernel(%arg0: i32, %arg1: memref<256x4xf32, #tpu.memory_space<vmem>>, %arg2: memref<4x128xbf16, #tpu.memory_space<vmem>>, %arg3: memref<1x128xf32, #tpu.memory_space<vmem>>, %arg4: memref<256x128xf32, #tpu.memory_space<vmem>>) attributes {dimension_semantics = [#tpu.dimension_semantics<parallel>], iteration_bounds = array<i64: 2>, scalar_prefetch = 0 : i64, scratch_operands = 0 : i64, tpu.core_type = #tpu.core_type<tc>, window_params = [{transform_indices = @transform_0, window_bounds = array<i64: 256, 4>}, {pipeline_mode = #tpu.pipeline_mode<synchronous>, transform_indices = @transform_1, window_bounds = array<i64: 4, 128>}, {pipeline_mode = #tpu.pipeline_mode<synchronous>, transform_indices = @transform_2, window_bounds = array<i64: 1, 128>}, {transform_indices = @transform_3, window_bounds = array<i64: 256, 128>}]} {
    %c0 = arith.constant 0 : index
    %c0_0 = arith.constant 0 : index
    %0 = vector.load %arg1[%c0, %c0_0] : memref<256x4xf32, #tpu.memory_space<vmem>>, vector<256x4xf32>
    %1 = arith.truncf %0 : vector<256x4xf32> to vector<256x4xbf16>
    %c0_1 = arith.constant 0 : index
    %c0_2 = arith.constant 0 : index
    %2 = vector.load %arg2[%c0_1, %c0_2] : memref<4x128xbf16, #tpu.memory_space<vmem>>, vector<4x128xbf16>
    %cst = arith.constant dense<0.000000e+00> : vector<256x128xf32>
    %3 = tpu.matmul %1, %2, %cst {dimension_numbers = #tpu.dot_dimension_numbers<[1], [0], [0], [1], [0, 0, 1, 1], [], []>} : vector<256x4xbf16>, vector<4x128xbf16>, vector<256x128xf32> -> vector<256x128xf32>
    %c0_3 = arith.constant 0 : index
    %c0_4 = arith.constant 0 : index
    %4 = vector.load %arg3[%c0_3, %c0_4] : memref<1x128xf32, #tpu.memory_space<vmem>>, vector<1x128xf32>
    %5 = vector.broadcast %4 : vector<1x128xf32> to vector<256x128xf32>
    %6 = arith.addf %3, %5 : vector<256x128xf32>
    %c0_5 = arith.constant 0 : index
    %c0_6 = arith.constant 0 : index
    %7 = vector.load %arg4[%c0_5, %c0_6] : memref<256x128xf32, #tpu.memory_space<vmem>>, vector<256x128xf32>
    tpu.vector_store %arg4[%c0_5, %c0_6], %6 {strides = array<i32>} : memref<256x128xf32, #tpu.memory_space<vmem>>, vector<256x128xf32>,
    return
  }
  func.func @transform_0(%arg0: i32) -> (i32, i32) {
    %c0_i32 = arith.constant 0 : i32
    %c0_i32_0 = arith.constant 0 : i32
    return %arg0, %c0_i32 : i32, i32
  }
  func.func @transform_1(%arg0: i32) -> (i32, i32) {
    %c0_i32 = arith.constant 0 : i32
    %c0_i32_0 = arith.constant 0 : i32
    %c0_i32_1 = arith.constant 0 : i32
    return %c0_i32, %c0_i32_0 : i32, i32
  }
  func.func @transform_2(%arg0: i32) -> (i32, i32) {
    %c0_i32 = arith.constant 0 : i32
    %c0_i32_0 = arith.constant 0 : i32
    %c0_i32_1 = arith.constant 0 : i32
    return %c0_i32, %c0_i32_0 : i32, i32
  }
  func.func @transform_3(%arg0: i32) -> (i32, i32) {
    %c0_i32 = arith.constant 0 : i32
    %c0_i32_0 = arith.constant 0 : i32
    return %arg0, %c0_i32 : i32, i32
  }
}

module attributes {stable_mosaic.version = 11 : i64} {
  func.func @_s4_block_epilogue_kernel(%arg0: i32, %arg1: memref<256x128xf32, #tpu.memory_space<vmem>>, %arg2: memref<256x128xf32, #tpu.memory_space<vmem>>, %arg3: memref<1x128xf32, #tpu.memory_space<vmem>>, %arg4: memref<128x128xbf16, #tpu.memory_space<vmem>>, %arg5: memref<1x128xf32, #tpu.memory_space<vmem>>, %arg6: memref<1x128xf32, #tpu.memory_space<vmem>>, %arg7: memref<1x128xf32, #tpu.memory_space<vmem>>, %arg8: memref<256x128xf32, #tpu.memory_space<vmem>>) attributes {dimension_semantics = [#tpu.dimension_semantics<parallel>], iteration_bounds = array<i64: 2>, scalar_prefetch = 0 : i64, scratch_operands = 0 : i64, tpu.core_type = #tpu.core_type<tc>, window_params = [{transform_indices = @transform_0, window_bounds = array<i64: 256, 128>}, {transform_indices = @transform_1, window_bounds = array<i64: 256, 128>}, {pipeline_mode = #tpu.pipeline_mode<synchronous>, transform_indices = @transform_2, window_bounds = array<i64: 1, 128>}, {pipeline_mode = #tpu.pipeline_mode<synchronous>, transform_indices = @transform_3, window_bounds = array<i64: 128, 128>}, {pipeline_mode = #tpu.pipeline_mode<synchronous>, transform_indices = @transform_4, window_bounds = array<i64: 1, 128>}, {pipeline_mode = #tpu.pipeline_mode<synchronous>, transform_indices = @transform_5, window_bounds = array<i64: 1, 128>}, {pipeline_mode = #tpu.pipeline_mode<synchronous>, transform_indices = @transform_6, window_bounds = array<i64: 1, 128>}, {transform_indices = @transform_7, window_bounds = array<i64: 256, 128>}]} {
    %c0 = arith.constant 0 : index
    %c0_0 = arith.constant 0 : index
    %0 = vector.load %arg2[%c0, %c0_0] : memref<256x128xf32, #tpu.memory_space<vmem>>, vector<256x128xf32>
    %c0_1 = arith.constant 0 : index
    %c0_2 = arith.constant 0 : index
    %1 = vector.load %arg1[%c0_1, %c0_2] : memref<256x128xf32, #tpu.memory_space<vmem>>, vector<256x128xf32>
    %c0_3 = arith.constant 0 : index
    %c0_4 = arith.constant 0 : index
    %2 = vector.load %arg3[%c0_3, %c0_4] : memref<1x128xf32, #tpu.memory_space<vmem>>, vector<1x128xf32>
    %3 = vector.broadcast %2 : vector<1x128xf32> to vector<256x128xf32>
    %4 = arith.mulf %0, %3 : vector<256x128xf32>
    %5 = arith.addf %1, %4 : vector<256x128xf32>
    %cst = arith.constant 5.000000e-01 : f32
    %6 = vector.broadcast %cst : f32 to vector<256x128xf32>
    %7 = arith.mulf %6, %5 : vector<256x128xf32>
    %cst_5 = arith.constant 4.471500e-02 : f32
    %8 = vector.broadcast %cst_5 : f32 to vector<256x128xf32>
    %9 = arith.mulf %8, %5 : vector<256x128xf32>
    %10 = arith.mulf %9, %5 : vector<256x128xf32>
    %11 = arith.mulf %10, %5 : vector<256x128xf32>
    %12 = arith.addf %5, %11 : vector<256x128xf32>
    %cst_6 = arith.constant 0.797884583 : f32
    %13 = vector.broadcast %cst_6 : f32 to vector<256x128xf32>
    %14 = arith.mulf %13, %12 : vector<256x128xf32>
    %15 = math.tanh %14 : vector<256x128xf32>
    %cst_7 = arith.constant 1.000000e+00 : f32
    %16 = vector.broadcast %cst_7 : f32 to vector<256x128xf32>
    %17 = arith.addf %16, %15 : vector<256x128xf32>
    %18 = arith.mulf %7, %17 : vector<256x128xf32>
    %19 = arith.truncf %18 : vector<256x128xf32> to vector<256x128xbf16>
    %c0_8 = arith.constant 0 : index
    %c0_9 = arith.constant 0 : index
    %20 = vector.load %arg4[%c0_8, %c0_9] : memref<128x128xbf16, #tpu.memory_space<vmem>>, vector<128x128xbf16>
    %cst_10 = arith.constant dense<0.000000e+00> : vector<256x128xf32>
    %21 = tpu.matmul %19, %20, %cst_10 {dimension_numbers = #tpu.dot_dimension_numbers<[1], [0], [0], [1], [0, 0, 1, 1], [], []>} : vector<256x128xbf16>, vector<128x128xbf16>, vector<256x128xf32> -> vector<256x128xf32>
    %c0_11 = arith.constant 0 : index
    %c0_12 = arith.constant 0 : index
    %22 = vector.load %arg5[%c0_11, %c0_12] : memref<1x128xf32, #tpu.memory_space<vmem>>, vector<1x128xf32>
    %23 = vector.broadcast %22 : vector<1x128xf32> to vector<256x128xf32>
    %24 = arith.addf %21, %23 : vector<256x128xf32>
    %cst_13 = arith.constant dense<0.000000e+00> : vector<256xf32>
    %25 = vector.multi_reduction <add>, %24, %cst_13 [1] : vector<256x128xf32> to vector<256xf32>
    %26 = vector.shape_cast %25 : vector<256xf32> to vector<256x1xf32>
    %cst_14 = arith.constant 1.280000e+02 : f32
    %27 = vector.broadcast %cst_14 : f32 to vector<256x1xf32>
    %28 = arith.divf %26, %27 : vector<256x1xf32>
    %29 = vector.broadcast %28 : vector<256x1xf32> to vector<256x128xf32>
    %30 = arith.subf %24, %29 : vector<256x128xf32>
    %31 = arith.mulf %30, %30 : vector<256x128xf32>
    %cst_15 = arith.constant dense<0.000000e+00> : vector<256xf32>
    %32 = vector.multi_reduction <add>, %31, %cst_15 [1] : vector<256x128xf32> to vector<256xf32>
    %33 = vector.shape_cast %32 : vector<256xf32> to vector<256x1xf32>
    %cst_16 = arith.constant 1.280000e+02 : f32
    %34 = vector.broadcast %cst_16 : f32 to vector<256x1xf32>
    %35 = arith.divf %33, %34 : vector<256x1xf32>
    %36 = vector.broadcast %28 : vector<256x1xf32> to vector<256x128xf32>
    %37 = arith.subf %24, %36 : vector<256x128xf32>
    %cst_17 = arith.constant 9.99999974E-6 : f32
    %38 = vector.broadcast %cst_17 : f32 to vector<256x1xf32>
    %39 = arith.addf %35, %38 : vector<256x1xf32>
    %40 = math.rsqrt %39 : vector<256x1xf32>
    %41 = vector.broadcast %40 : vector<256x1xf32> to vector<256x128xf32>
    %42 = arith.mulf %37, %41 : vector<256x128xf32>
    %c0_18 = arith.constant 0 : index
    %c0_19 = arith.constant 0 : index
    %43 = vector.load %arg6[%c0_18, %c0_19] : memref<1x128xf32, #tpu.memory_space<vmem>>, vector<1x128xf32>
    %44 = vector.broadcast %43 : vector<1x128xf32> to vector<256x128xf32>
    %45 = arith.mulf %42, %44 : vector<256x128xf32>
    %c0_20 = arith.constant 0 : index
    %c0_21 = arith.constant 0 : index
    %46 = vector.load %arg7[%c0_20, %c0_21] : memref<1x128xf32, #tpu.memory_space<vmem>>, vector<1x128xf32>
    %47 = vector.broadcast %46 : vector<1x128xf32> to vector<256x128xf32>
    %48 = arith.addf %45, %47 : vector<256x128xf32>
    %49 = arith.addf %48, %0 : vector<256x128xf32>
    %c0_22 = arith.constant 0 : index
    %c0_23 = arith.constant 0 : index
    %50 = vector.load %arg8[%c0_22, %c0_23] : memref<256x128xf32, #tpu.memory_space<vmem>>, vector<256x128xf32>
    tpu.vector_store %arg8[%c0_22, %c0_23], %49 {strides = array<i32>} : memref<256x128xf32, #tpu.memory_space<vmem>>, vector<256x128xf32>,
    return
  }
  func.func @transform_0(%arg0: i32) -> (i32, i32) {
    %c0_i32 = arith.constant 0 : i32
    %c0_i32_0 = arith.constant 0 : i32
    return %arg0, %c0_i32 : i32, i32
  }
  func.func @transform_1(%arg0: i32) -> (i32, i32) {
    %c0_i32 = arith.constant 0 : i32
    %c0_i32_0 = arith.constant 0 : i32
    return %arg0, %c0_i32 : i32, i32
  }
  func.func @transform_2(%arg0: i32) -> (i32, i32) {
    %c0_i32 = arith.constant 0 : i32
    %c0_i32_0 = arith.constant 0 : i32
    %c0_i32_1 = arith.constant 0 : i32
    return %c0_i32, %c0_i32_0 : i32, i32
  }
  func.func @transform_3(%arg0: i32) -> (i32, i32) {
    %c0_i32 = arith.constant 0 : i32
    %c0_i32_0 = arith.constant 0 : i32
    %c0_i32_1 = arith.constant 0 : i32
    return %c0_i32, %c0_i32_0 : i32, i32
  }
  func.func @transform_4(%arg0: i32) -> (i32, i32) {
    %c0_i32 = arith.constant 0 : i32
    %c0_i32_0 = arith.constant 0 : i32
    %c0_i32_1 = arith.constant 0 : i32
    return %c0_i32, %c0_i32_0 : i32, i32
  }
  func.func @transform_5(%arg0: i32) -> (i32, i32) {
    %c0_i32 = arith.constant 0 : i32
    %c0_i32_0 = arith.constant 0 : i32
    %c0_i32_1 = arith.constant 0 : i32
    return %c0_i32, %c0_i32_0 : i32, i32
  }
  func.func @transform_6(%arg0: i32) -> (i32, i32) {
    %c0_i32 = arith.constant 0 : i32
    %c0_i32_0 = arith.constant 0 : i32
    %c0_i32_1 = arith.constant 0 : i32
    return %c0_i32, %c0_i32_0 : i32, i32
  }
  func.func @transform_7(%arg0: i32) -> (i32, i32) {
    %c0_i32 = arith.constant 0 : i32
    %c0_i32_0 = arith.constant 0 : i32
    return %arg0, %c0_i32 : i32, i32
  }
}

module attributes {stable_mosaic.version = 11 : i64} {
  func.func @_linear_kernel(%arg0: i32, %arg1: memref<256x128xf32, #tpu.memory_space<vmem>>, %arg2: memref<128x128xbf16, #tpu.memory_space<vmem>>, %arg3: memref<1x128xf32, #tpu.memory_space<vmem>>, %arg4: memref<256x128xf32, #tpu.memory_space<vmem>>) attributes {dimension_semantics = [#tpu.dimension_semantics<parallel>], iteration_bounds = array<i64: 2>, scalar_prefetch = 0 : i64, scratch_operands = 0 : i64, tpu.core_type = #tpu.core_type<tc>, window_params = [{transform_indices = @transform_0, window_bounds = array<i64: 256, 128>}, {pipeline_mode = #tpu.pipeline_mode<synchronous>, transform_indices = @transform_1, window_bounds = array<i64: 128, 128>}, {pipeline_mode = #tpu.pipeline_mode<synchronous>, transform_indices = @transform_2, window_bounds = array<i64: 1, 128>}, {transform_indices = @transform_3, window_bounds = array<i64: 256, 128>}]} {
    %c0 = arith.constant 0 : index
    %c0_0 = arith.constant 0 : index
    %0 = vector.load %arg1[%c0, %c0_0] : memref<256x128xf32, #tpu.memory_space<vmem>>, vector<256x128xf32>
    %1 = arith.truncf %0 : vector<256x128xf32> to vector<256x128xbf16>
    %c0_1 = arith.constant 0 : index
    %c0_2 = arith.constant 0 : index
    %2 = vector.load %arg2[%c0_1, %c0_2] : memref<128x128xbf16, #tpu.memory_space<vmem>>, vector<128x128xbf16>
    %cst = arith.constant dense<0.000000e+00> : vector<256x128xf32>
    %3 = tpu.matmul %1, %2, %cst {dimension_numbers = #tpu.dot_dimension_numbers<[1], [0], [0], [1], [0, 0, 1, 1], [], []>} : vector<256x128xbf16>, vector<128x128xbf16>, vector<256x128xf32> -> vector<256x128xf32>
    %c0_3 = arith.constant 0 : index
    %c0_4 = arith.constant 0 : index
    %4 = vector.load %arg3[%c0_3, %c0_4] : memref<1x128xf32, #tpu.memory_space<vmem>>, vector<1x128xf32>
    %5 = vector.broadcast %4 : vector<1x128xf32> to vector<256x128xf32>
    %6 = arith.addf %3, %5 : vector<256x128xf32>
    %c0_5 = arith.constant 0 : index
    %c0_6 = arith.constant 0 : index
    %7 = vector.load %arg4[%c0_5, %c0_6] : memref<256x128xf32, #tpu.memory_space<vmem>>, vector<256x128xf32>
    tpu.vector_store %arg4[%c0_5, %c0_6], %6 {strides = array<i32>} : memref<256x128xf32, #tpu.memory_space<vmem>>, vector<256x128xf32>,
    return
  }
  func.func @transform_0(%arg0: i32) -> (i32, i32) {
    %c0_i32 = arith.constant 0 : i32
    %c0_i32_0 = arith.constant 0 : i32
    return %arg0, %c0_i32 : i32, i32
  }
  func.func @transform_1(%arg0: i32) -> (i32, i32) {
    %c0_i32 = arith.constant 0 : i32
    %c0_i32_0 = arith.constant 0 : i32
    %c0_i32_1 = arith.constant 0 : i32
    return %c0_i32, %c0_i32_0 : i32, i32
  }
  func.func @transform_2(%arg0: i32) -> (i32, i32) {
    %c0_i32 = arith.constant 0 : i32
    %c0_i32_0 = arith.constant 0 : i32
    %c0_i32_1 = arith.constant 0 : i32
    return %c0_i32, %c0_i32_0 : i32, i32
  }
  func.func @transform_3(%arg0: i32) -> (i32, i32) {
    %c0_i32 = arith.constant 0 : i32
    %c0_i32_0 = arith.constant 0 : i32
    return %arg0, %c0_i32 : i32, i32
  }
}

</mosaic_0001>

<bundles_post_ra>
// kernel: s4_model_forward.4
= control target key start
LH: loop header
LB: loop body
LE: loop exit
PB: predicated region body
PF: predicated region fallthrough
CT: control target
= control target key end

     0   :  { %s652_s12 = smov 0   ;;  %s800_s0 = inlined_call_operand.vmem [shape: f32[512,4], index: 0, kind: input, shape index: {}]   ;;  %s801_s1 = inlined_call_operand.vmem [shape: bf16[4,128], index: 1, kind: input, shape index: {}]   ;;  %s802_s2 = inlined_call_operand.vmem [shape: f32[1,128], index: 2, kind: input, shape index: {}]   ;;  %s803_s3 = inlined_call_operand.vmem [shape: f32[512,128], index: 3, kind: output, shape index: {}]  }
   0x1 LB: > { %s533_s13 = sadd.s32 4294967295, %s630_s12   ;;  %p537_p0 = scmp.ge.s32.totalorder %s630_s12, 1  ;;  %s630_s12 = sphi %s652_s12, %s13_s12  }
   0x2   : > { %p138_p1 = scmp.lt.s32.totalorder %s630_s12, 3 }
   0x4   : > { %p139_p2 = pnand %p537_p0, %p138_p1 }
   0x5   : > { %v223_v0 = vld [vmem:[%s801_s1] sm:$0x3] (!%p139_p2)  ;;  %vm280_vm0 = vcmask (!%p139_p2), 1041408   ;;  %s538_s16 = sshll.u32 (!%p139_p2), %s533_s13, 5  ;;  %vm231_vm1 = vcmask (!%p139_p2), 31744  }
   0x6   : > { %142 = sbr.rel (%p139_p2) target bundleno = 263 (0x107), region = 32  ;;  %614 = vmatprep.subr.msk.bf16.mxu0 (!%p139_p2), %vm280_vm0, %v223_v0  ;;  %615 = vmatprep.subr.msk.bf16.mxu1 (!%p139_p2), %vm280_vm0, %v223_v0  ;;  %v282_v1 = vsel (!%p139_p2), %vm280_vm0, %v223_v0, 0  ;;  %p163_p3 = scmp.lt.s32.totalorder (!%p139_p2), %s538_s16, 63  ;;  %v724_v50 = vld [vmem:[%s802_s2] ss:$0 sm:$0xff] (!%p139_p2) }
   0x7   : > { %579 = vmatpush3.bf16.msra.mxu0 (!%p139_p2), %v282_v1  ;;  %613 = vmatpush3.bf16.msra.mxu1 (!%p139_p2), %v282_v1 }
   0xd   : > { %s805_s16 = smov (!%p163_p3, %s538_s16), 63 }
   0xe   : > { %s539_s17 = sshll.u32 %s805_s16, 3 }
   0xf   : > { %s671_s20 = scalar_lea.vmem %s800_s0, %s539_s17  ;;  %s731_s25 = scalar_lea.vmem %s803_s3, %s539_s17 }
  0x10   : > { %v175_v2 = vld [vmem:[%s671_s20] sm:$0xff]  ;;  %v176_v3 = vld [vmem:[%s671_s20 + $0x8] sm:$0xff]  ;;  %v177_v7 = vld [vmem:[%s671_s20 + $0x10] sm:$0xff] }
  0x11   : > { %v191_v4 = vld [vmem:[%s671_s20 + $0x80] sm:$0xff]  ;;  %v207_v5 = vpack.c.bf16 %v176_v3, %v175_v2  ;;  %v192_v6 = vld [vmem:[%s671_s20 + $0x88] sm:$0xff]  ;;  %v178_v8 = vld [vmem:[%s671_s20 + $0x18] sm:$0xff] }
  0x12   : > { %v215_v9 = vpack.c.bf16 %v192_v6, %v191_v4  ;;  %v208_v10 = vpack.c.bf16 %v178_v8, %v177_v7  ;;  %v193_v11 = vld [vmem:[%s671_s20 + $0x90] sm:$0xff]  ;;  %v194_v12 = vld [vmem:[%s671_s20 + $0x98] sm:$0xff]  ;;  %v179_v13 = vld [vmem:[%s671_s20 + $0x20] sm:$0xff] }
  0x13   : > { %580 = vmatprep.mubr.msk.bf16.mxu0 %vm231_vm1, %v207_v5  ;;  %v216_v14 = vpack.c.bf16 %v194_v12, %v193_v11  ;;  %v180_v15 = vld [vmem:[%s671_s20 + $0x28] sm:$0xff]  ;;  %v195_v16 = vld [vmem:[%s671_s20 + $0xa0] sm:$0xff]  ;;  %v181_v20 = vld [vmem:[%s671_s20 + $0x30] sm:$0xff] }
  0x14   : > { %v196_v17 = vld [vmem:[%s671_s20 + $0xa8] sm:$0xff]  ;;  %596 = vmatprep.mubr.msk.bf16.mxu1 %vm231_vm1, %v215_v9  ;;  %581 = vmatmul.mubr.msk.bf16.vlgmr.msra.gmra.mrb[0].mxu0 %vm231_vm1, %v208_v10  ;;  %v209_v18 = vpack.c.bf16 %v180_v15, %v179_v13  ;;  %v182_v21 = vld [vmem:[%s671_s20 + $0x38] sm:$0xff]  ;;  %v197_v22 = vld [vmem:[%s671_s20 + $0xb0] sm:$0xff] }
  0x15   : > { %v217_v19 = vpack.c.bf16 %v196_v17, %v195_v16  ;;  %597 = vmatmul.mubr.msk.bf16.vlgmr.msra.gmra.mrb[0].mxu1 %vm231_vm1, %v216_v14  ;;  %v198_v23 = vld [vmem:[%s671_s20 + $0xb8] sm:$0xff]  ;;  %v183_v24 = vld [vmem:[%s671_s20 + $0x40] sm:$0xff]  ;;  %v184_v25 = vld [vmem:[%s671_s20 + $0x48] sm:$0xff]  ;;  %v210_v28 = vpack.c.bf16 %v182_v21, %v181_v20 }
  0x16   : > { %584 = vmatprep.mubr.msk.bf16.mxu0 %vm231_vm1, %v209_v18  ;;  %v199_v26 = vld [vmem:[%s671_s20 + $0xc0] sm:$0xff]  ;;  %v200_v27 = vld [vmem:[%s671_s20 + $0xc8] sm:$0xff]  ;;  %v218_v29 = vpack.c.bf16 %v198_v23, %v197_v22  ;;  %v211_v30 = vpack.c.bf16 %v184_v25, %v183_v24  ;;  %v185_v32 = vld [vmem:[%s671_s20 + $0x50] sm:$0xff] }
  0x17   : > { %600 = vmatprep.mubr.msk.bf16.mxu1 %vm231_vm1, %v217_v19  ;;  %v219_v31 = vpack.c.bf16 %v200_v27, %v199_v26  ;;  %v186_v33 = vld [vmem:[%s671_s20 + $0x58] sm:$0xff]  ;;  %v201_v34 = vld [vmem:[%s671_s20 + $0xd0] sm:$0xff]  ;;  %v187_v36 = vld [vmem:[%s671_s20 + $0x60] sm:$0xff] }
  0x18   : > { %v202_v35 = vld [vmem:[%s671_s20 + $0xd8] sm:$0xff]  ;;  %v188_v37 = vld [vmem:[%s671_s20 + $0x68] sm:$0xff]  ;;  %v203_v38 = vld [vmem:[%s671_s20 + $0xe0] sm:$0xff]  ;;  %v212_v40 = vpack.c.bf16 %v186_v33, %v185_v32 }
  0x19   : > { %v204_v39 = vld [vmem:[%s671_s20 + $0xe8] sm:$0xff]  ;;  %v220_v41 = vpack.c.bf16 %v202_v35, %v201_v34  ;;  %v213_v42 = vpack.c.bf16 %v188_v37, %v187_v36  ;;  %v189_v44 = vld [vmem:[%s671_s20 + $0x70] sm:$0xff]  ;;  %v190_v45 = vld [vmem:[%s671_s20 + $0x78] sm:$0xff] }
  0x1a   : > { %v221_v43 = vpack.c.bf16 %v204_v39, %v203_v38  ;;  %v205_v46 = vld [vmem:[%s671_s20 + $0xf0] sm:$0xff]  ;;  %v206_v47 = vld [vmem:[%s671_s20 + $0xf8] sm:$0xff]  ;;  %v214_v48 = vpack.c.bf16 %v190_v45, %v189_v44 }
  0x1b   : > { %v222_v49 = vpack.c.bf16 %v206_v47, %v205_v46 }
  0x1c   : > { %585 = vmatmul.mubr.msk.bf16.gmra.mrb[4].mxu0 %vm231_vm1, %v210_v28 }
  0x1d   : > { %601 = vmatmul.mubr.msk.bf16.gmra.mrb[4].mxu1 %vm231_vm1, %v218_v29  ;;  %588 = vmatprep.mubr.msk.bf16.mxu0 %vm231_vm1, %v211_v30 }
  0x1e   : > { %604 = vmatprep.mubr.msk.bf16.mxu1 %vm231_vm1, %v219_v31 }
  0x24   : > { %589 = vmatmul.mubr.msk.bf16.gmra.mrb[8].mxu0 %vm231_vm1, %v212_v40 }
  0x25   : > { %605 = vmatmul.mubr.msk.bf16.gmra.mrb[8].mxu1 %vm231_vm1, %v220_v41  ;;  %592 = vmatprep.mubr.msk.bf16.mxu0 %vm231_vm1, %v213_v42 }
  0x26   : > { %608 = vmatprep.mubr.msk.bf16.mxu1 %vm231_vm1, %v221_v43 }
  0x2c   : > { %593 = vmatmul.mubr.msk.bf16.gmra.mrb[12].mxu0 %vm231_vm1, %v214_v48 }
  0x2d   : > { %609 = vmatmul.mubr.msk.bf16.gmra.mrb[12].mxu1 %vm231_vm1, %v222_v49 }
  0xe7   : > { %v582_v51 = vpop.f32.mrb[0].mxu0 }
  0xe8   : > { %v327_v52 = vadd.f32 %v582_v51, %v724_v50  ;;  %v598_v53 = vpop.f32.mrb[0].mxu1  ;;  %v318_v54 = vpop.f32.mrb[1].mxu0 }
  0xe9   : > { %v391_v55 = vadd.f32 %v598_v53, %v724_v50  ;;  %v319_v56 = vadd.f32 %v724_v50, %v318_v54  ;;  %v382_v57 = vpop.f32.mrb[1].mxu1  ;;  %v583_v58 = vpop.f32.mrb[2].mxu0 }
  0xea   : > { %447 = vst [vmem:[%s731_s25 + $0x10] sm:$0xff] %v327_v52  ;;  %v383_v59 = vadd.f32 %v724_v50, %v382_v57  ;;  %v330_v60 = vadd.f32 %v583_v58, %v724_v50  ;;  %v599_v61 = vpop.f32.mrb[2].mxu1  ;;  %v321_v62 = vpop.f32.mrb[3].mxu0 }
  0xeb   : > { %463 = vst [vmem:[%s731_s25 + $0x90] sm:$0xff] %v391_v55  ;;  %445 = vst [vmem:[%s731_s25] sm:$0xff] %v319_v56  ;;  %v394_v63 = vadd.f32 %v599_v61, %v724_v50  ;;  %v322_v0 = vadd.f32 %v724_v50, %v321_v62  ;;  %v385_v1 = vpop.f32.mrb[3].mxu1 }
  0xec   : > { %461 = vst [vmem:[%s731_s25 + $0x80] sm:$0xff] %v383_v59  ;;  %448 = vst [vmem:[%s731_s25 + $0x18] sm:$0xff] %v330_v60  ;;  %v386_v2 = vadd.f32 %v724_v50, %v385_v1 }
  0xed   : > { %464 = vst [vmem:[%s731_s25 + $0x98] sm:$0xff] %v394_v63  ;;  %446 = vst [vmem:[%s731_s25 + $0x8] sm:$0xff] %v322_v0 }
  0xee   : > { %462 = vst [vmem:[%s731_s25 + $0x88] sm:$0xff] %v386_v2 }
  0xef   : > { %v586_v3 = vpop.f32.mrb[4].mxu0 }
  0xf0   : > { %v343_v4 = vadd.f32 %v586_v3, %v724_v50  ;;  %v602_v5 = vpop.f32.mrb[4].mxu1  ;;  %v334_v6 = vpop.f32.mrb[5].mxu0 }
  0xf1   : > { %v407_v7 = vadd.f32 %v602_v5, %v724_v50  ;;  %v335_v8 = vadd.f32 %v724_v50, %v334_v6  ;;  %v398_v9 = vpop.f32.mrb[5].mxu1  ;;  %v587_v10 = vpop.f32.mrb[6].mxu0 }
  0xf2   : > { %451 = vst [vmem:[%s731_s25 + $0x30] sm:$0xff] %v343_v4  ;;  %v399_v11 = vadd.f32 %v724_v50, %v398_v9  ;;  %v346_v12 = vadd.f32 %v587_v10, %v724_v50  ;;  %v603_v13 = vpop.f32.mrb[6].mxu1  ;;  %v337_v14 = vpop.f32.mrb[7].mxu0 }
  0xf3   : > { %467 = vst [vmem:[%s731_s25 + $0xb0] sm:$0xff] %v407_v7  ;;  %449 = vst [vmem:[%s731_s25 + $0x20] sm:$0xff] %v335_v8  ;;  %v410_v15 = vadd.f32 %v603_v13, %v724_v50  ;;  %v338_v16 = vadd.f32 %v724_v50, %v337_v14  ;;  %v401_v17 = vpop.f32.mrb[7].mxu1 }
  0xf4   : > { %465 = vst [vmem:[%s731_s25 + $0xa0] sm:$0xff] %v399_v11  ;;  %452 = vst [vmem:[%s731_s25 + $0x38] sm:$0xff] %v346_v12  ;;  %v402_v18 = vadd.f32 %v724_v50, %v401_v17 }
  0xf5   : > { %468 = vst [vmem:[%s731_s25 + $0xb8] sm:$0xff] %v410_v15  ;;  %450 = vst [vmem:[%s731_s25 + $0x28] sm:$0xff] %v338_v16 }
  0xf6   : > { %466 = vst [vmem:[%s731_s25 + $0xa8] sm:$0xff] %v402_v18 }
  0xf7   : > { %v590_v19 = vpop.f32.mrb[8].mxu0 }
  0xf8   : > { %v359_v20 = vadd.f32 %v590_v19, %v724_v50  ;;  %v606_v21 = vpop.f32.mrb[8].mxu1  ;;  %v350_v22 = vpop.f32.mrb[9].mxu0 }
  0xf9   : > { %v423_v23 = vadd.f32 %v606_v21, %v724_v50  ;;  %v351_v24 = vadd.f32 %v724_v50, %v350_v22  ;;  %v414_v25 = vpop.f32.mrb[9].mxu1  ;;  %v591_v26 = vpop.f32.mrb[10].mxu0 }
  0xfa   : > { %455 = vst [vmem:[%s731_s25 + $0x50] sm:$0xff] %v359_v20  ;;  %v415_v27 = vadd.f32 %v724_v50, %v414_v25  ;;  %v362_v28 = vadd.f32 %v591_v26, %v724_v50  ;;  %v607_v29 = vpop.f32.mrb[10].mxu1  ;;  %v353_v30 = vpop.f32.mrb[11].mxu0 }
  0xfb   : > { %471 = vst [vmem:[%s731_s25 + $0xd0] sm:$0xff] %v423_v23  ;;  %453 = vst [vmem:[%s731_s25 + $0x40] sm:$0xff] %v351_v24  ;;  %v426_v31 = vadd.f32 %v607_v29, %v724_v50  ;;  %v354_v32 = vadd.f32 %v724_v50, %v353_v30  ;;  %v417_v33 = vpop.f32.mrb[11].mxu1 }
  0xfc   : > { %469 = vst [vmem:[%s731_s25 + $0xc0] sm:$0xff] %v415_v27  ;;  %456 = vst [vmem:[%s731_s25 + $0x58] sm:$0xff] %v362_v28  ;;  %v418_v34 = vadd.f32 %v724_v50, %v417_v33 }
  0xfd   : > { %472 = vst [vmem:[%s731_s25 + $0xd8] sm:$0xff] %v426_v31  ;;  %454 = vst [vmem:[%s731_s25 + $0x48] sm:$0xff] %v354_v32 }
  0xfe   : > { %470 = vst [vmem:[%s731_s25 + $0xc8] sm:$0xff] %v418_v34 }
  0xff   : > { %v594_v35 = vpop.f32.mrb[12].mxu0 }
 0x100   : > { %v375_v36 = vadd.f32 %v594_v35, %v724_v50  ;;  %v610_v37 = vpop.f32.mrb[12].mxu1  ;;  %v366_v38 = vpop.f32.mrb[13].mxu0 }
 0x101   : > { %v439_v39 = vadd.f32 %v610_v37, %v724_v50  ;;  %v367_v40 = vadd.f32 %v724_v50, %v366_v38  ;;  %v430_v41 = vpop.f32.mrb[13].mxu1  ;;  %v595_v42 = vpop.f32.mrb[14].mxu0 }
 0x102   : > { %459 = vst [vmem:[%s731_s25 + $0x70] sm:$0xff] %v375_v36  ;;  %v431_v43 = vadd.f32 %v724_v50, %v430_v41  ;;  %v378_v44 = vadd.f32 %v595_v42, %v724_v50  ;;  %v611_v45 = vpop.f32.mrb[14].mxu1  ;;  %v369_v46 = vpop.f32.mrb[15].mxu0 }
 0x103   : > { %475 = vst [vmem:[%s731_s25 + $0xf0] sm:$0xff] %v439_v39  ;;  %457 = vst [vmem:[%s731_s25 + $0x60] sm:$0xff] %v367_v40  ;;  %v442_v47 = vadd.f32 %v611_v45, %v724_v50  ;;  %v370_v48 = vadd.f32 %v724_v50, %v369_v46  ;;  %v433_v49 = vpop.f32.mrb[15].mxu1 }
 0x104   : > { %473 = vst [vmem:[%s731_s25 + $0xe0] sm:$0xff] %v431_v43  ;;  %460 = vst [vmem:[%s731_s25 + $0x78] sm:$0xff] %v378_v44  ;;  %v434_v51 = vadd.f32 %v724_v50, %v433_v49 }
 0x105   : > { %476 = vst [vmem:[%s731_s25 + $0xf8] sm:$0xff] %v442_v47  ;;  %458 = vst [vmem:[%s731_s25 + $0x68] sm:$0xff] %v370_v48 }
 0x106   : > { %474 = vst [vmem:[%s731_s25 + $0xe8] sm:$0xff] %v434_v51 }
 0x107 PF: > { %s13_s12 = sadd.s32 1, %s630_s12  }
 0x108   : > { %p10_p4 = scmp.ge.s32.totalorder %s13_s12, 4  }
 0x10a   :  { %12 = sbr.rel (!%p10_p4) target bundleno = 1 (0x1), region = 62 }

// kernel: reverse.5
= control target key start
LH: loop header
LB: loop body
LE: loop exit
PB: predicated region body
PF: predicated region fallthrough
CT: control target
= control target key end

     0   :  { %s1034_s6 = smov 0   ;;  %s1036_s7 = smov 0   ;;  %s1322_s0 = inlined_call_operand.vmem [shape: f32[2,128,255], index: 0, kind: input, shape index: {}]   ;;  %s1323_s1 = inlined_call_operand.vmem [shape: f32[2,128,255], index: 1, kind: output, shape index: {}]  }
   0x1   :  { %s1038_s8 = smov 0   ;;  %s1040_s9 = smov 0  }
   0x2   :  { %s1042_s10 = smov 0  }
   0x3 LB: > { %s722_s11 = sadd.s32 4294967295, %s990_s10   ;;  %s22_s12 = sadd.s32 1, %s982_s8  ;;  %s990_s10 = sphi %s1042_s10, %s7_s10   ;;  %s986_s9 = sphi %s1040_s9, %s1330_s9   ;;  %s982_s8 = sphi %s1038_s8, %s1329_s8   ;;  %s978_s7 = sphi %s1036_s7, %s1328_s7   ;;  %s974_s6 = sphi %s1034_s6, %s1327_s6  }
   0x4   : > { %p24_p0 = scmp.ge.s32.totalorder %s22_s12, 2  ;;  %s26_s13 = sadd.s32 1, %s986_s9 }
   0x5   : > { %p724_p2 = scmp.ge.s32.totalorder %s990_s10, 4 }
   0x6   : > { %s1332_s12 = smov (%p24_p0, %s22_s12), 0  ;;  %s1334_s13 = smov (!%p24_p0, %s26_s13), %s986_s9 }
   0x7   : > { %p28_p1 = scmp.ge.s32.totalorder %s1334_s13, 2  ;;  %40 = sbr.rel (%p724_p2) target bundleno = 78 (0x4e), region = 16 }
   0x8   : > { %s42_s14 = sand.u32 (!%p724_p2), 1, %s990_s10   ;;  %s45_s15 = ssub.s32 (!%p724_p2), 1, %s982_s8 }
   0x9   : > { %s1336_s13 = smov (%p28_p1, %s1334_s13), 0  ;;  %s725_s16 = sshll.u32 (!%p724_p2), %s45_s15, 4 }
   0xa   : > { %s809_s17 = smul.u32 (!%p724_p2), 136, %s42_s14  ;;  %s47_s18 = ssub.s32 (!%p724_p2), 1, %s725_s16 }
   0xb   : > { %p48_p3 = scmp.gt.s32.totalorder (!%p724_p2), %s47_s18, 0  ;;  %s729_s19 = sshll.u32 (!%p724_p2), %s986_s9, 5 }
   0xc   : > { %s44_s27 = scalar_lea.vmem (!%p724_p2), [#allocation0], %s809_s17 }
   0xe   : > { %s1338_s18 = smov (!%p48_p3, %s47_s18), 0 }
   0xf   : > { %s1071_s20 = ssub.s32 17, %s1338_s18  ;;  %s53_s21 = sadd.s32 %s725_s16, %s1338_s18 }
  0x10   : > { %s726_s22 = sshll.u32 %s1071_s20, 7  ;;  %s728_s23 = sadd.s32 4294967295, %s53_s21 }
  0x11   : > { %s57_s24 = sadd.s32 %s729_s19, %s728_s23  ;;  %s731_s25 = sshll.u32 %s1338_s18, 3 }
  0x12   : > { %s730_s26 = sshll.u32 %s57_s24, 3  ;;  %s1074_s28 = scalar_lea.vmem %s44_s27, %s731_s25 [#allocation0]  }
  0x13   : > { %s1079_s2 = scalar_lea.vmem %s1322_s0, %s730_s26   ;;  %p732_p4 = scmp.eq.s32.totalorder %s726_s22, 0 }
  0x14   : > { %916 = sdivrem.u32 (!%p732_p4), %s1071_s20, 17 }
  0x15   : > { %65 = sbr.rel (%p732_p4) target bundleno = 78 (0x4e), region = 20 }
  0x1d   : > { %s1082_s3 = spop.drf %916 }
  0x1e   : > { %p733_p5 = scmp.le.s32.totalorder %s1082_s3, 0 }
  0x1f   : > { %s1324_s4 = smov (!%p733_p5), %s1074_s28  ;;  %s1325_s5 = smov (!%p733_p5), %s1079_s2 }
  0x20   : > { %679 = sbr.rel (%p733_p5) target bundleno = 49 (0x31), region = 213  ;;  %s1091_s14 = smov (!%p733_p5), 0  }
  0x21   : > { %s1093_s15 = smov (!%p733_p5), 0  }
  0x27 LB: >> { %v161_v0 = vld [vmem:[%s998_s5] sm:$0xff]  ;;  %v163_v1 = vld [vmem:[%s998_s5 + $0x8] sm:$0xff]  ;;  %v165_v2 = vld [vmem:[%s998_s5 + $0x10] sm:$0xff]  ;;  %s195_s16 = sadd.s32 1, %s1002_s14  ;;  %s155_s15 = sadd.s32 1, %s1006_s15   ;;  %s1006_s15 = sphi %s1093_s15, %s155_s15   ;;  %s1002_s14 = sphi %s1091_s14, %s1326_s14   ;;  %s998_s5 = sphi %s1325_s5, %s200_s5   ;;  %s994_s4 = sphi %s1324_s4, %s201_s4  }
  0x28   : >> { %162 = vst [vmem:[%s994_s4] sm:$0xff] %v161_v0  ;;  %164 = vst [vmem:[%s994_s4 + $0x8] sm:$0xff] %v163_v1  ;;  %v167_v3 = vld [vmem:[%s998_s5 + $0x18] sm:$0xff]  ;;  %v169_v4 = vld [vmem:[%s998_s5 + $0x20] sm:$0xff]  ;;  %p196_p6 = scmp.ge.s32.totalorder %s195_s16, %s1082_s3  ;;  %p154_p7 = scmp.ge.s32.totalorder %s155_s15, %s1082_s3 }
  0x29   : >> { %166 = vst [vmem:[%s994_s4 + $0x10] sm:$0xff] %v165_v2  ;;  %v171_v5 = vld [vmem:[%s998_s5 + $0x28] sm:$0xff]  ;;  %168 = vst [vmem:[%s994_s4 + $0x18] sm:$0xff] %v167_v3  ;;  %v173_v6 = vld [vmem:[%s998_s5 + $0x30] sm:$0xff] }
  0x2a   : >> { %170 = vst [vmem:[%s994_s4 + $0x20] sm:$0xff] %v169_v4  ;;  %172 = vst [vmem:[%s994_s4 + $0x28] sm:$0xff] %v171_v5  ;;  %v175_v7 = vld [vmem:[%s998_s5 + $0x38] sm:$0xff]  ;;  %v177_v8 = vld [vmem:[%s998_s5 + $0x40] sm:$0xff]  ;;  %s1340_s16 = smov (%p196_p6, %s195_s16), 0  ;;  %157 = sbr.rel (!%p154_p7) target bundleno = 39 (0x27), region = 219 }
  0x2b   : >> { %174 = vst [vmem:[%s994_s4 + $0x30] sm:$0xff] %v173_v6  ;;  %176 = vst [vmem:[%s994_s4 + $0x38] sm:$0xff] %v175_v7  ;;  %v179_v9 = vld [vmem:[%s998_s5 + $0x48] sm:$0xff]  ;;  %v181_v10 = vld [vmem:[%s998_s5 + $0x50] sm:$0xff]  ;;  %s198_s17 = smul.u32 136, %s1340_s16  ;;  %s1326_s14 = smov %s1340_s16 }
  0x2c   : >> { %178 = vst [vmem:[%s994_s4 + $0x40] sm:$0xff] %v177_v8  ;;  %v183_v11 = vld [vmem:[%s998_s5 + $0x58] sm:$0xff]  ;;  %180 = vst [vmem:[%s994_s4 + $0x48] sm:$0xff] %v179_v9  ;;  %v185_v12 = vld [vmem:[%s998_s5 + $0x60] sm:$0xff] }
  0x2d   : >> { %182 = vst [vmem:[%s994_s4 + $0x50] sm:$0xff] %v181_v10  ;;  %184 = vst [vmem:[%s994_s4 + $0x58] sm:$0xff] %v183_v11  ;;  %v187_v13 = vld [vmem:[%s998_s5 + $0x68] sm:$0xff]  ;;  %v189_v14 = vld [vmem:[%s998_s5 + $0x70] sm:$0xff] }
  0x2e   : >> { %186 = vst [vmem:[%s994_s4 + $0x60] sm:$0xff] %v185_v12  ;;  %188 = vst [vmem:[%s994_s4 + $0x68] sm:$0xff] %v187_v13  ;;  %v191_v15 = vld [vmem:[%s998_s5 + $0x78] sm:$0xff]  ;;  %v193_v16 = vld [vmem:[%s998_s5 + $0x80] sm:$0xff]  ;;  %s200_s5 = scalar_lea.vmem %s1079_s2, %s198_s17  }
  0x2f   : >> { %190 = vst [vmem:[%s994_s4 + $0x70] sm:$0xff] %v189_v14  ;;  %192 = vst [vmem:[%s994_s4 + $0x78] sm:$0xff] %v191_v15 }
  0x30   : >> { %194 = vst [vmem:[%s994_s4 + $0x80] sm:$0xff] %v193_v16  ;;  %s201_s4 = scalar_lea.vmem %s1074_s28, %s198_s17 [#allocation0]  }
  0x31 PF: > { %918 = sdivrem.u32 %s1071_s20, 17 }
  0x32   : > { %s734_s18 = smul.u32 136, %s1082_s3 }
  0x34   : > { %s206_s19 = scalar_lea.vmem %s1079_s2, %s734_s18   ;;  %s208_s20 = scalar_lea.vmem %s1074_s28, %s734_s18 [#allocation0]  }
  0x3a   : > { %s919_s21 = spop.drf %918 }
  0x3b   : > { %p736_p8 = scmp.le.s32.totalorder %s919_s21, 0 }
  0x3c   : > { %s1008_s22 = smov (!%p736_p8), %s208_s20   ;;  %s1012_s23 = smov (!%p736_p8), %s206_s19  }
  0x3d   : > { %693 = sbr.rel (%p736_p8) target bundleno = 78 (0x4e), region = 224  ;;  %s1016_s24 = smov (!%p736_p8), 0  }
  0x3e   : > { %s1020_s25 = smov (!%p736_p8), 0  }
  0x44 LB: >> { %v218_v17 = vld [vmem:[%s1014_s23] sm:$0xff]  ;;  %s220_s26 = sadd.s32 1, %s1018_s24  ;;  %s212_s25 = sadd.s32 1, %s1022_s25   ;;  %s1022_s25 = sphi %s1020_s25, %s212_s25   ;;  %s1018_s24 = sphi %s1016_s24, %s1017_s24   ;;  %s1014_s23 = sphi %s1012_s23, %s225_s23   ;;  %s1010_s22 = sphi %s1008_s22, %s226_s22  }
  0x45   : >> { %219 = vst [vmem:[%s1010_s22] sm:$0xff] %v218_v17  ;;  %p221_p9 = scmp.ge.s32.totalorder %s220_s26, %s919_s21  ;;  %p211_p10 = scmp.ge.s32.totalorder %s212_s25, %s919_s21 }
  0x47   : >> { %s1342_s26 = smov (%p221_p9, %s220_s26), 0  ;;  %214 = sbr.rel (!%p211_p10) target bundleno = 68 (0x44), region = 230 }
  0x48   : >> { %s737_s27 = sshll.u32 %s1342_s26, 3  ;;  %s1017_s24 = smov %s1342_s26  }
  0x49   : >> { %s225_s23 = scalar_lea.vmem %s206_s19, %s737_s27   ;;  %s226_s22 = scalar_lea.vmem %s208_s20, %s737_s27 [#allocation0]  }
  0x4e PF: > { %p739_p11 = scmp.ge.s32.totalorder %s990_s10, 1  ;;  %p231_p12 = scmp.lt.s32.totalorder %s990_s10, 5 }
  0x50   : > { %p232_p13 = pnand %p739_p11, %p231_p12 }
  0x51   : > { %s238_s11 = sand.u32 (!%p232_p13), 1, %s722_s11   ;;  %v266_v18 = vlaneseq (!%p232_p13)  ;;  %s804_s6 = sshll.u32 (!%p232_p13), %s974_s6, 4 }
  0x52   : > { %235 = sbr.rel (%p232_p13) target bundleno = 121 (0x79), region = 68  ;;  %s740_s29 = sshll.u32 (!%p232_p13), %s238_s11, 7 }
  0x53   : > { %s810_s28 = smul.u32 (!%p232_p13), 136, %s238_s11  ;;  %v1161_v19 = vshrl.u32 (!%p232_p13), %v266_v18, 7  ;;  %s805_s7 = sshll.u32 (!%p232_p13), %s978_s7, 5 }
  0x54   : > { %s1164_s30 = sadd.s32 (!%p232_p13), %s805_s7, %s804_s6  ;;  %s1176_s4 = scalar_lea.vmem (!%p232_p13), [#allocation1], %s740_s29 }
  0x55   : > { %s1166_s2 = scalar_lea.vmem (!%p232_p13), [#allocation0], %s810_s28  ;;  %vm268_vm0 = vcmp.lt.s32.totalorder (!%p232_p13), %v1161_v19, 7  ;;  %s806_s3 = sshll.u32 (!%p232_p13), %s1164_s30, 3 }
  0x56   : > { %v741_v20 = vld [vmem:[%s1166_s2 + $0x7f] ss:$-1 sm:$0xff] (!%p232_p13)  ;;  %v742_v21 = vld [vmem:[%s1166_s2 + $0x87] ss:$-1 sm:$0xff] (!%p232_p13)  ;;  %v743_v24 = vld [vmem:[%s1166_s2 + $0x77] ss:$-1 sm:$0xff] (!%p232_p13)  ;;  %s1252_s15 = scalar_lea.vmem (!%p232_p13), %s1323_s1, %s806_s3 }
  0x57   : > { %v260_v22 = vrot.slane (!%p232_p13), %v741_v20, 1  ;;  %v265_v23 = vrot.slane (!%p232_p13), %v742_v21, 1  ;;  %v745_v25 = vld [vmem:[%s1166_s2 + $0x7f] ss:$-1 sm:$0xff] (!%p232_p13)  ;;  %v274_v26 = vrot.slane (!%p232_p13), %v743_v24, 1 }
  0x58   : > { %v279_v27 = vrot.slane (!%p232_p13), %v745_v25, 1  ;;  %v747_v28 = vld [vmem:[%s1166_s2 + $0x6f] ss:$-1 sm:$0xff] (!%p232_p13)  ;;  %v749_v29 = vld [vmem:[%s1166_s2 + $0x77] ss:$-1 sm:$0xff] (!%p232_p13) }
  0x59   : > { %261 = vst [vmem:[%s1176_s4] sm:$0xff] %v260_v22  ;;  %v288_v30 = vrot.slane %v747_v28, 1  ;;  %v293_v31 = vrot.slane %v749_v29, 1  ;;  %v751_v32 = vld [vmem:[%s1166_s2 + $0x67] ss:$-1 sm:$0xff]  ;;  %v753_v33 = vld [vmem:[%s1166_s2 + $0x6f] ss:$-1 sm:$0xff] }
  0x5a   : > { %269 = vst.msk [vmem:[%s1176_s4] sm:$0xff] %vm268_vm0, %v265_v23  ;;  %744 = vst [vmem:[%s1176_s4 + $0x8] sm:$0xff] %v274_v26  ;;  %v302_v34 = vrot.slane %v751_v32, 1  ;;  %v307_v35 = vrot.slane %v753_v33, 1  ;;  %v755_v36 = vld [vmem:[%s1166_s2 + $0x5f] ss:$-1 sm:$0xff] }
  0x5b   : > { %v757_v37 = vld [vmem:[%s1166_s2 + $0x67] ss:$-1 sm:$0xff]  ;;  %746 = vst.msk [vmem:[%s1176_s4 + $0x8] sm:$0xff] %vm268_vm0, %v279_v27  ;;  %748 = vst [vmem:[%s1176_s4 + $0x10] sm:$0xff] %v288_v30  ;;  %v316_v38 = vrot.slane %v755_v36, 1 }
  0x5c   : > { %v321_v39 = vrot.slane %v757_v37, 1  ;;  %v759_v40 = vld [vmem:[%s1166_s2 + $0x57] ss:$-1 sm:$0xff]  ;;  %v761_v41 = vld [vmem:[%s1166_s2 + $0x5f] ss:$-1 sm:$0xff]  ;;  %750 = vst.msk [vmem:[%s1176_s4 + $0x10] sm:$0xff] %vm268_vm0, %v293_v31 }
  0x5d   : > { %752 = vst [vmem:[%s1176_s4 + $0x18] sm:$0xff] %v302_v34  ;;  %v330_v42 = vrot.slane %v759_v40, 1  ;;  %v335_v43 = vrot.slane %v761_v41, 1  ;;  %v763_v44 = vld [vmem:[%s1166_s2 + $0x4f] ss:$-1 sm:$0xff]  ;;  %756 = vst [vmem:[%s1176_s4 + $0x20] sm:$0xff] %v316_v38 }
  0x5e   : > { %v765_v45 = vld [vmem:[%s1166_s2 + $0x57] ss:$-1 sm:$0xff]  ;;  %754 = vst.msk [vmem:[%s1176_s4 + $0x18] sm:$0xff] %vm268_vm0, %v307_v35  ;;  %v344_v46 = vrot.slane %v763_v44, 1  ;;  %v767_v48 = vld [vmem:[%s1166_s2 + $0x47] ss:$-1 sm:$0xff] }
  0x5f   : > { %v349_v47 = vrot.slane %v765_v45, 1  ;;  %v769_v49 = vld [vmem:[%s1166_s2 + $0x4f] ss:$-1 sm:$0xff]  ;;  %758 = vst.msk [vmem:[%s1176_s4 + $0x20] sm:$0xff] %vm268_vm0, %v321_v39  ;;  %760 = vst [vmem:[%s1176_s4 + $0x28] sm:$0xff] %v330_v42  ;;  %v358_v50 = vrot.slane %v767_v48, 1 }
  0x60   : > { %v363_v51 = vrot.slane %v769_v49, 1  ;;  %v771_v52 = vld [vmem:[%s1166_s2 + $0x3f] ss:$-1 sm:$0xff]  ;;  %v773_v53 = vld [vmem:[%s1166_s2 + $0x47] ss:$-1 sm:$0xff]  ;;  %762 = vst.msk [vmem:[%s1176_s4 + $0x28] sm:$0xff] %vm268_vm0, %v335_v43 }
  0x61   : > { %764 = vst [vmem:[%s1176_s4 + $0x30] sm:$0xff] %v344_v46  ;;  %v372_v54 = vrot.slane %v771_v52, 1  ;;  %v377_v55 = vrot.slane %v773_v53, 1  ;;  %v775_v56 = vld [vmem:[%s1166_s2 + $0x37] ss:$-1 sm:$0xff]  ;;  %768 = vst [vmem:[%s1176_s4 + $0x38] sm:$0xff] %v358_v50 }
  0x62   : > { %v777_v57 = vld [vmem:[%s1166_s2 + $0x3f] ss:$-1 sm:$0xff]  ;;  %766 = vst.msk [vmem:[%s1176_s4 + $0x30] sm:$0xff] %vm268_vm0, %v349_v47  ;;  %v386_v58 = vrot.slane %v775_v56, 1  ;;  %v779_v60 = vld [vmem:[%s1166_s2 + $0x2f] ss:$-1 sm:$0xff] }
  0x63   : > { %v391_v59 = vrot.slane %v777_v57, 1  ;;  %v781_v61 = vld [vmem:[%s1166_s2 + $0x37] ss:$-1 sm:$0xff]  ;;  %770 = vst.msk [vmem:[%s1176_s4 + $0x38] sm:$0xff] %vm268_vm0, %v363_v51  ;;  %772 = vst [vmem:[%s1176_s4 + $0x40] sm:$0xff] %v372_v54  ;;  %v400_v62 = vrot.slane %v779_v60, 1 }
  0x64   : > { %v405_v63 = vrot.slane %v781_v61, 1  ;;  %v783_v0 = vld [vmem:[%s1166_s2 + $0x27] ss:$-1 sm:$0xff]  ;;  %v785_v1 = vld [vmem:[%s1166_s2 + $0x2f] ss:$-1 sm:$0xff]  ;;  %774 = vst.msk [vmem:[%s1176_s4 + $0x40] sm:$0xff] %vm268_vm0, %v377_v55 }
  0x65   : > { %776 = vst [vmem:[%s1176_s4 + $0x48] sm:$0xff] %v386_v58  ;;  %v414_v2 = vrot.slane %v783_v0, 1  ;;  %v419_v3 = vrot.slane %v785_v1, 1  ;;  %v787_v4 = vld [vmem:[%s1166_s2 + $0x1f] ss:$-1 sm:$0xff]  ;;  %780 = vst [vmem:[%s1176_s4 + $0x50] sm:$0xff] %v400_v62 }
  0x66   : > { %v789_v5 = vld [vmem:[%s1166_s2 + $0x27] ss:$-1 sm:$0xff]  ;;  %778 = vst.msk [vmem:[%s1176_s4 + $0x48] sm:$0xff] %vm268_vm0, %v391_v59  ;;  %v428_v6 = vrot.slane %v787_v4, 1  ;;  %v791_v8 = vld [vmem:[%s1166_s2 + $0x17] ss:$-1 sm:$0xff] }
  0x67   : > { %v433_v7 = vrot.slane %v789_v5, 1  ;;  %v793_v9 = vld [vmem:[%s1166_s2 + $0x1f] ss:$-1 sm:$0xff]  ;;  %782 = vst.msk [vmem:[%s1176_s4 + $0x50] sm:$0xff] %vm268_vm0, %v405_v63  ;;  %784 = vst [vmem:[%s1176_s4 + $0x58] sm:$0xff] %v414_v2  ;;  %v442_v10 = vrot.slane %v791_v8, 1 }
  0x68   : > { %v447_v11 = vrot.slane %v793_v9, 1  ;;  %v795_v12 = vld [vmem:[%s1166_s2 + $0xf] ss:$-1 sm:$0xff]  ;;  %v797_v13 = vld [vmem:[%s1166_s2 + $0x17] ss:$-1 sm:$0xff]  ;;  %786 = vst.msk [vmem:[%s1176_s4 + $0x58] sm:$0xff] %vm268_vm0, %v419_v3 }
  0x69   : > { %788 = vst [vmem:[%s1176_s4 + $0x60] sm:$0xff] %v428_v6  ;;  %v456_v14 = vrot.slane %v795_v12, 1  ;;  %v461_v15 = vrot.slane %v797_v13, 1  ;;  %v799_v16 = vld [vmem:[%s1166_s2 + $0x7] ss:$-1 sm:$0xff]  ;;  %792 = vst [vmem:[%s1176_s4 + $0x68] sm:$0xff] %v442_v10 }
  0x6a   : > { %v801_v17 = vld [vmem:[%s1166_s2 + $0xf] ss:$-1 sm:$0xff]  ;;  %790 = vst.msk [vmem:[%s1176_s4 + $0x60] sm:$0xff] %vm268_vm0, %v433_v7  ;;  %v469_v18 = vrot.slane %v799_v16, 1  ;;  %v548_v22 = vld [vmem:[%s1176_s4 + $0x8] sm:$0xff]  ;;  %v550_v23 = vld [vmem:[%s1176_s4 + $0x10] sm:$0xff] }
  0x6b   : > { %v474_v20 = vrot.slane %v801_v17, 1  ;;  %v546_v21 = vld [vmem:[%s1176_s4] sm:$0xff]  ;;  %794 = vst.msk [vmem:[%s1176_s4 + $0x68] sm:$0xff] %vm268_vm0, %v447_v11  ;;  %796 = vst [vmem:[%s1176_s4 + $0x70] sm:$0xff] %v456_v14  ;;  %v552_v24 = vld [vmem:[%s1176_s4 + $0x18] sm:$0xff] }
  0x6c   : > { %547 = vst [vmem:[%s1252_s15] sm:$0xff] %v546_v21  ;;  %549 = vst [vmem:[%s1252_s15 + $0x8] sm:$0xff] %v548_v22  ;;  %v554_v25 = vld [vmem:[%s1176_s4 + $0x20] sm:$0xff]  ;;  %v556_v26 = vld [vmem:[%s1176_s4 + $0x28] sm:$0xff] }
  0x6d   : > { %551 = vst [vmem:[%s1252_s15 + $0x10] sm:$0xff] %v550_v23  ;;  %798 = vst.msk [vmem:[%s1176_s4 + $0x70] sm:$0xff] %vm268_vm0, %v461_v15  ;;  %v558_v27 = vld [vmem:[%s1176_s4 + $0x30] sm:$0xff]  ;;  %v560_v28 = vld [vmem:[%s1176_s4 + $0x38] sm:$0xff] }
  0x6e   : > { %800 = vst [vmem:[%s1176_s4 + $0x78] sm:$0xff] %v469_v18  ;;  %553 = vst [vmem:[%s1252_s15 + $0x18] sm:$0xff] %v552_v24  ;;  %v562_v19 = vld [vmem:[%s1176_s4 + $0x40] sm:$0xff]  ;;  %v564_v29 = vld [vmem:[%s1176_s4 + $0x48] sm:$0xff] }
  0x6f   : > { %555 = vst [vmem:[%s1252_s15 + $0x20] sm:$0xff] %v554_v25  ;;  %557 = vst [vmem:[%s1252_s15 + $0x28] sm:$0xff] %v556_v26  ;;  %v566_v30 = vld [vmem:[%s1176_s4 + $0x50] sm:$0xff]  ;;  %v568_v31 = vld [vmem:[%s1176_s4 + $0x58] sm:$0xff] }
  0x70   : > { %802 = vst.msk [vmem:[%s1176_s4 + $0x78] sm:$0xff] %vm268_vm0, %v474_v20  ;;  %559 = vst [vmem:[%s1252_s15 + $0x30] sm:$0xff] %v558_v27 }
  0x71   : > { %561 = vst [vmem:[%s1252_s15 + $0x38] sm:$0xff] %v560_v28  ;;  %563 = vst [vmem:[%s1252_s15 + $0x40] sm:$0xff] %v562_v19  ;;  %v570_v32 = vld [vmem:[%s1176_s4 + $0x60] sm:$0xff] }
  0x72   : > { %565 = vst [vmem:[%s1252_s15 + $0x48] sm:$0xff] %v564_v29  ;;  %567 = vst [vmem:[%s1252_s15 + $0x50] sm:$0xff] %v566_v30  ;;  %v572_v33 = vld [vmem:[%s1176_s4 + $0x68] sm:$0xff] }
  0x73   : > { %569 = vst [vmem:[%s1252_s15 + $0x58] sm:$0xff] %v568_v31  ;;  %571 = vst [vmem:[%s1252_s15 + $0x60] sm:$0xff] %v570_v32 }
  0x74   : > { %573 = vst [vmem:[%s1252_s15 + $0x68] sm:$0xff] %v572_v33  ;;  %v574_v34 = vld [vmem:[%s1176_s4 + $0x70] sm:$0xff] }
  0x75   : > { %575 = vst [vmem:[%s1252_s15 + $0x70] sm:$0xff] %v574_v34 }
  0x77   : > { %v576_v35 = vld [vmem:[%s1176_s4 + $0x78] sm:$0xff] }
  0x78   : > { %577 = vst [vmem:[%s1252_s15 + $0x78] sm:$0xff] %v576_v35 }
  0x79 PF: > { %s7_s10 = sadd.s32 1, %s990_s10   ;;  %s1327_s6 = smov %s982_s8 }
  0x7a   : > { %p4_p0 = scmp.ge.s32.totalorder %s7_s10, 6   ;;  %s1328_s7 = smov %s986_s9 }
  0x7b   : > { %s1329_s8 = smov %s1332_s12  ;;  %s1330_s9 = smov %s1336_s13 }
  0x7c   :  { %6 = sbr.rel (!%p4_p0) target bundleno = 3 (0x3), region = 241 }

// kernel: s4_model_forward.7
= control target key start
LH: loop header
LB: loop body
LE: loop exit
PB: predicated region body
PF: predicated region fallthrough
CT: control target
= control target key end

     0   :  { %s695_s12 = smov 0   ;;  %s848_s0 = inlined_call_operand.vmem [shape: f32[512,128], index: 0, kind: input, shape index: {}]   ;;  %s849_s1 = inlined_call_operand.vmem [shape: bf16[128,128], index: 1, kind: input, shape index: {}]   ;;  %s850_s2 = inlined_call_operand.vmem [shape: f32[1,128], index: 2, kind: input, shape index: {}]   ;;  %s851_s3 = inlined_call_operand.vmem [shape: f32[512,128], index: 3, kind: output, shape index: {}]  }
   0x1 LB: > { %s543_s13 = sadd.s32 4294967295, %s673_s12   ;;  %p547_p0 = scmp.ge.s32.totalorder %s673_s12, 1  ;;  %s673_s12 = sphi %s695_s12, %s13_s12  }
   0x2   : > { %p138_p1 = scmp.lt.s32.totalorder %s673_s12, 3 }
   0x4   : > { %p139_p2 = pnand %p547_p0, %p138_p1 }
   0x5   : > { %v659_v0 = vld [vmem:[%s849_s1] sm:$0xff] (!%p139_p2)   ;;  %s548_s16 = sshll.u32 (!%p139_p2), %s543_s13, 5  ;;  %v660_v1 = vld [vmem:[%s849_s1 + $0x8] sm:$0xff] (!%p139_p2)   ;;  %v661_v2 = vld [vmem:[%s849_s1 + $0x10] sm:$0xff] (!%p139_p2)  }
   0x6   : > { %142 = sbr.rel (%p139_p2) target bundleno = 281 (0x119), region = 32  ;;  %p163_p3 = scmp.lt.s32.totalorder (!%p139_p2), %s548_s16, 63  ;;  %587 = vmatprep.subr.bf16.mxu0 (!%p139_p2), %v659_v0  ;;  %635 = vmatprep.subr.bf16.mxu1 (!%p139_p2), %v659_v0  ;;  %v662_v3 = vld [vmem:[%s849_s1 + $0x18] sm:$0xff] (!%p139_p2)   ;;  %v663_v10 = vld [vmem:[%s849_s1 + $0x20] sm:$0xff] (!%p139_p2)   ;;  %v664_v11 = vld [vmem:[%s849_s1 + $0x28] sm:$0xff] (!%p139_p2)  }
   0x7   : > { %588 = vmatpush3.bf16.msra.mxu0 (!%p139_p2), %v659_v0  ;;  %643 = vmatpush3.bf16.msra.mxu1 (!%p139_p2), %v659_v0  ;;  %v665_v12 = vld [vmem:[%s849_s1 + $0x30] sm:$0xff] (!%p139_p2)   ;;  %v666_v13 = vld [vmem:[%s849_s1 + $0x38] sm:$0xff] (!%p139_p2)   ;;  %v772_v56 = vld [vmem:[%s850_s2] ss:$0 sm:$0xff] (!%p139_p2) }
   0x8   : > { %589 = vmatprep.subr.bf16.mxu0 (!%p139_p2), %v660_v1  ;;  %636 = vmatprep.subr.bf16.mxu1 (!%p139_p2), %v660_v1 }
   0xb   : > { %590 = vmatpush3.bf16.msra.mxu0 (!%p139_p2), %v660_v1  ;;  %644 = vmatpush3.bf16.msra.mxu1 (!%p139_p2), %v660_v1 }
   0xc   : > { %591 = vmatprep.subr.bf16.mxu0 (!%p139_p2), %v661_v2  ;;  %637 = vmatprep.subr.bf16.mxu1 (!%p139_p2), %v661_v2 }
   0xd   : > { %s853_s16 = smov (!%p163_p3, %s548_s16), 63 }
   0xe   : > { %s549_s21 = sshll.u32 %s853_s16, 3 }
   0xf   : > { %s720_s24 = scalar_lea.vmem %s848_s0, %s549_s21  ;;  %592 = vmatpush3.bf16.msra.mxu0 %v661_v2  ;;  %645 = vmatpush3.bf16.msra.mxu1 %v661_v2  ;;  %s779_s13 = scalar_lea.vmem %s851_s3, %s549_s21 }
  0x10   : > { %v175_v4 = vld [vmem:[%s720_s24] sm:$0xff]  ;;  %v176_v5 = vld [vmem:[%s720_s24 + $0x8] sm:$0xff]  ;;  %593 = vmatprep.subr.bf16.mxu0 %v662_v3  ;;  %638 = vmatprep.subr.bf16.mxu1 %v662_v3  ;;  %v177_v14 = vld [vmem:[%s720_s24 + $0x10] sm:$0xff] }
  0x11   : > { %v191_v6 = vld [vmem:[%s720_s24 + $0x80] sm:$0xff]  ;;  %v207_v7 = vpack.c.bf16 %v176_v5, %v175_v4  ;;  %v192_v8 = vld [vmem:[%s720_s24 + $0x88] sm:$0xff]  ;;  %v178_v15 = vld [vmem:[%s720_s24 + $0x18] sm:$0xff] }
  0x12   : > { %v215_v9 = vpack.c.bf16 %v192_v8, %v191_v6  ;;  %v193_v16 = vld [vmem:[%s720_s24 + $0x90] sm:$0xff]  ;;  %v194_v17 = vld [vmem:[%s720_s24 + $0x98] sm:$0xff]  ;;  %v179_v18 = vld [vmem:[%s720_s24 + $0x20] sm:$0xff]  ;;  %v208_v22 = vpack.c.bf16 %v178_v15, %v177_v14 }
  0x13   : > { %603 = vmatprep.mubr.bf16.mxu0 %v207_v7  ;;  %594 = vmatpush3.bf16.msra.mxu0 %v662_v3  ;;  %v180_v19 = vld [vmem:[%s720_s24 + $0x28] sm:$0xff]  ;;  %v195_v20 = vld [vmem:[%s720_s24 + $0xa0] sm:$0xff]  ;;  %v216_v23 = vpack.c.bf16 %v194_v17, %v193_v16  ;;  %v181_v26 = vld [vmem:[%s720_s24 + $0x30] sm:$0xff] }
  0x14   : > { %619 = vmatprep.mubr.bf16.mxu1 %v215_v9  ;;  %646 = vmatpush3.bf16.msra.mxu1 %v662_v3  ;;  %v196_v21 = vld [vmem:[%s720_s24 + $0xa8] sm:$0xff]  ;;  %v209_v24 = vpack.c.bf16 %v180_v19, %v179_v18  ;;  %v182_v27 = vld [vmem:[%s720_s24 + $0x38] sm:$0xff]  ;;  %v197_v28 = vld [vmem:[%s720_s24 + $0xb0] sm:$0xff] }
  0x15   : > { %595 = vmatprep.subr.bf16.mxu0 %v663_v10  ;;  %639 = vmatprep.subr.bf16.mxu1 %v663_v10  ;;  %v217_v25 = vpack.c.bf16 %v196_v21, %v195_v20  ;;  %v198_v29 = vld [vmem:[%s720_s24 + $0xb8] sm:$0xff]  ;;  %v183_v30 = vld [vmem:[%s720_s24 + $0x40] sm:$0xff]  ;;  %v184_v31 = vld [vmem:[%s720_s24 + $0x48] sm:$0xff]  ;;  %v210_v34 = vpack.c.bf16 %v182_v27, %v181_v26 }
  0x16   : > { %v199_v32 = vld [vmem:[%s720_s24 + $0xc0] sm:$0xff]  ;;  %v200_v33 = vld [vmem:[%s720_s24 + $0xc8] sm:$0xff]  ;;  %v218_v35 = vpack.c.bf16 %v198_v29, %v197_v28  ;;  %v211_v36 = vpack.c.bf16 %v184_v31, %v183_v30  ;;  %v185_v38 = vld [vmem:[%s720_s24 + $0x50] sm:$0xff] }
  0x17   : > { %596 = vmatpush3.bf16.msra.mxu0 %v663_v10  ;;  %v219_v37 = vpack.c.bf16 %v200_v33, %v199_v32  ;;  %v186_v39 = vld [vmem:[%s720_s24 + $0x58] sm:$0xff]  ;;  %v201_v40 = vld [vmem:[%s720_s24 + $0xd0] sm:$0xff]  ;;  %v187_v42 = vld [vmem:[%s720_s24 + $0x60] sm:$0xff] }
  0x18   : > { %647 = vmatpush3.bf16.msra.mxu1 %v663_v10  ;;  %597 = vmatprep.subr.bf16.mxu0 %v664_v11  ;;  %v202_v41 = vld [vmem:[%s720_s24 + $0xd8] sm:$0xff]  ;;  %v188_v43 = vld [vmem:[%s720_s24 + $0x68] sm:$0xff]  ;;  %v203_v44 = vld [vmem:[%s720_s24 + $0xe0] sm:$0xff]  ;;  %v212_v46 = vpack.c.bf16 %v186_v39, %v185_v38 }
  0x19   : > { %640 = vmatprep.subr.bf16.mxu1 %v664_v11  ;;  %v204_v45 = vld [vmem:[%s720_s24 + $0xe8] sm:$0xff]  ;;  %v220_v47 = vpack.c.bf16 %v202_v41, %v201_v40  ;;  %v213_v48 = vpack.c.bf16 %v188_v43, %v187_v42  ;;  %v189_v50 = vld [vmem:[%s720_s24 + $0x70] sm:$0xff]  ;;  %v190_v51 = vld [vmem:[%s720_s24 + $0x78] sm:$0xff] }
  0x1a   : > { %v221_v49 = vpack.c.bf16 %v204_v45, %v203_v44  ;;  %v205_v52 = vld [vmem:[%s720_s24 + $0xf0] sm:$0xff]  ;;  %v206_v53 = vld [vmem:[%s720_s24 + $0xf8] sm:$0xff]  ;;  %v214_v54 = vpack.c.bf16 %v190_v51, %v189_v50 }
  0x1b   : > { %598 = vmatpush3.bf16.msra.mxu0 %v664_v11  ;;  %v222_v55 = vpack.c.bf16 %v206_v53, %v205_v52 }
  0x1c   : > { %648 = vmatpush3.bf16.msra.mxu1 %v664_v11  ;;  %599 = vmatprep.subr.bf16.mxu0 %v665_v12 }
  0x1d   : > { %641 = vmatprep.subr.bf16.mxu1 %v665_v12 }
  0x1f   : > { %600 = vmatpush3.bf16.msra.mxu0 %v665_v12 }
  0x20   : > { %649 = vmatpush3.bf16.msra.mxu1 %v665_v12  ;;  %601 = vmatprep.subr.bf16.mxu0 %v666_v13 }
  0x21   : > { %642 = vmatprep.subr.bf16.mxu1 %v666_v13 }
  0x23   : > { %602 = vmatpush3.bf16.msra.mxu0 %v666_v13 }
  0x24   : > { %650 = vmatpush3.bf16.msra.mxu1 %v666_v13 }
  0x26   : > { %604 = vmatmul.mubr.bf16.vlgmr.msra.gmra.mrb[0].mxu0 %v208_v22 }
  0x27   : > { %620 = vmatmul.mubr.bf16.vlgmr.msra.gmra.mrb[0].mxu1 %v216_v23  ;;  %607 = vmatprep.mubr.bf16.mxu0 %v209_v24 }
  0x28   : > { %623 = vmatprep.mubr.bf16.mxu1 %v217_v25 }
  0x2e   : > { %608 = vmatmul.mubr.bf16.gmra.mrb[4].mxu0 %v210_v34 }
  0x2f   : > { %624 = vmatmul.mubr.bf16.gmra.mrb[4].mxu1 %v218_v35  ;;  %611 = vmatprep.mubr.bf16.mxu0 %v211_v36 }
  0x30   : > { %627 = vmatprep.mubr.bf16.mxu1 %v219_v37 }
  0x36   : > { %612 = vmatmul.mubr.bf16.gmra.mrb[8].mxu0 %v212_v46 }
  0x37   : > { %628 = vmatmul.mubr.bf16.gmra.mrb[8].mxu1 %v220_v47  ;;  %615 = vmatprep.mubr.bf16.mxu0 %v213_v48 }
  0x38   : > { %631 = vmatprep.mubr.bf16.mxu1 %v221_v49 }
  0x3e   : > { %616 = vmatmul.mubr.bf16.gmra.mrb[12].mxu0 %v214_v54 }
  0x3f   : > { %632 = vmatmul.mubr.bf16.gmra.mrb[12].mxu1 %v222_v55 }
  0xf9   : > { %v605_v57 = vpop.f32.mrb[0].mxu0 }
  0xfa   : > { %v621_v58 = vpop.f32.mrb[0].mxu1  ;;  %v337_v59 = vadd.f32 %v605_v57, %v772_v56  ;;  %v328_v61 = vpop.f32.mrb[1].mxu0 }
  0xfb   : > { %v401_v60 = vadd.f32 %v621_v58, %v772_v56  ;;  %v392_v62 = vpop.f32.mrb[1].mxu1  ;;  %v329_v63 = vadd.f32 %v772_v56, %v328_v61  ;;  %v606_v1 = vpop.f32.mrb[2].mxu0 }
  0xfc   : > { %v393_v0 = vadd.f32 %v772_v56, %v392_v62  ;;  %v622_v2 = vpop.f32.mrb[2].mxu1  ;;  %457 = vst [vmem:[%s779_s13 + $0x10] sm:$0xff] %v337_v59  ;;  %v340_v3 = vadd.f32 %v606_v1, %v772_v56  ;;  %v331_v5 = vpop.f32.mrb[3].mxu0 }
  0xfd   : > { %473 = vst [vmem:[%s779_s13 + $0x90] sm:$0xff] %v401_v60  ;;  %v404_v4 = vadd.f32 %v622_v2, %v772_v56  ;;  %v395_v6 = vpop.f32.mrb[3].mxu1  ;;  %455 = vst [vmem:[%s779_s13] sm:$0xff] %v329_v63  ;;  %v332_v7 = vadd.f32 %v772_v56, %v331_v5 }
  0xfe   : > { %471 = vst [vmem:[%s779_s13 + $0x80] sm:$0xff] %v393_v0  ;;  %v396_v8 = vadd.f32 %v772_v56, %v395_v6  ;;  %458 = vst [vmem:[%s779_s13 + $0x18] sm:$0xff] %v340_v3 }
  0xff   : > { %474 = vst [vmem:[%s779_s13 + $0x98] sm:$0xff] %v404_v4  ;;  %456 = vst [vmem:[%s779_s13 + $0x8] sm:$0xff] %v332_v7 }
 0x100   : > { %472 = vst [vmem:[%s779_s13 + $0x88] sm:$0xff] %v396_v8 }
 0x101   : > { %v609_v9 = vpop.f32.mrb[4].mxu0 }
 0x102   : > { %v625_v10 = vpop.f32.mrb[4].mxu1  ;;  %v353_v11 = vadd.f32 %v609_v9, %v772_v56  ;;  %v344_v13 = vpop.f32.mrb[5].mxu0 }
 0x103   : > { %v417_v12 = vadd.f32 %v625_v10, %v772_v56  ;;  %v408_v14 = vpop.f32.mrb[5].mxu1  ;;  %v345_v15 = vadd.f32 %v772_v56, %v344_v13  ;;  %v610_v17 = vpop.f32.mrb[6].mxu0 }
 0x104   : > { %v409_v16 = vadd.f32 %v772_v56, %v408_v14  ;;  %v626_v18 = vpop.f32.mrb[6].mxu1  ;;  %461 = vst [vmem:[%s779_s13 + $0x30] sm:$0xff] %v353_v11  ;;  %v356_v19 = vadd.f32 %v610_v17, %v772_v56  ;;  %v347_v21 = vpop.f32.mrb[7].mxu0 }
 0x105   : > { %477 = vst [vmem:[%s779_s13 + $0xb0] sm:$0xff] %v417_v12  ;;  %v420_v20 = vadd.f32 %v626_v18, %v772_v56  ;;  %v411_v22 = vpop.f32.mrb[7].mxu1  ;;  %459 = vst [vmem:[%s779_s13 + $0x20] sm:$0xff] %v345_v15  ;;  %v348_v23 = vadd.f32 %v772_v56, %v347_v21 }
 0x106   : > { %475 = vst [vmem:[%s779_s13 + $0xa0] sm:$0xff] %v409_v16  ;;  %v412_v24 = vadd.f32 %v772_v56, %v411_v22  ;;  %462 = vst [vmem:[%s779_s13 + $0x38] sm:$0xff] %v356_v19 }
 0x107   : > { %478 = vst [vmem:[%s779_s13 + $0xb8] sm:$0xff] %v420_v20  ;;  %460 = vst [vmem:[%s779_s13 + $0x28] sm:$0xff] %v348_v23 }
 0x108   : > { %476 = vst [vmem:[%s779_s13 + $0xa8] sm:$0xff] %v412_v24 }
 0x109   : > { %v613_v25 = vpop.f32.mrb[8].mxu0 }
 0x10a   : > { %v629_v26 = vpop.f32.mrb[8].mxu1  ;;  %v369_v27 = vadd.f32 %v613_v25, %v772_v56  ;;  %v360_v29 = vpop.f32.mrb[9].mxu0 }
 0x10b   : > { %v433_v28 = vadd.f32 %v629_v26, %v772_v56  ;;  %v424_v30 = vpop.f32.mrb[9].mxu1  ;;  %v361_v31 = vadd.f32 %v772_v56, %v360_v29  ;;  %v614_v33 = vpop.f32.mrb[10].mxu0 }
 0x10c   : > { %v425_v32 = vadd.f32 %v772_v56, %v424_v30  ;;  %v630_v34 = vpop.f32.mrb[10].mxu1  ;;  %465 = vst [vmem:[%s779_s13 + $0x50] sm:$0xff] %v369_v27  ;;  %v372_v35 = vadd.f32 %v614_v33, %v772_v56  ;;  %v363_v37 = vpop.f32.mrb[11].mxu0 }
 0x10d   : > { %481 = vst [vmem:[%s779_s13 + $0xd0] sm:$0xff] %v433_v28  ;;  %v436_v36 = vadd.f32 %v630_v34, %v772_v56  ;;  %v427_v38 = vpop.f32.mrb[11].mxu1  ;;  %463 = vst [vmem:[%s779_s13 + $0x40] sm:$0xff] %v361_v31  ;;  %v364_v39 = vadd.f32 %v772_v56, %v363_v37 }
 0x10e   : > { %479 = vst [vmem:[%s779_s13 + $0xc0] sm:$0xff] %v425_v32  ;;  %v428_v40 = vadd.f32 %v772_v56, %v427_v38  ;;  %466 = vst [vmem:[%s779_s13 + $0x58] sm:$0xff] %v372_v35 }
 0x10f   : > { %482 = vst [vmem:[%s779_s13 + $0xd8] sm:$0xff] %v436_v36  ;;  %464 = vst [vmem:[%s779_s13 + $0x48] sm:$0xff] %v364_v39 }
 0x110   : > { %480 = vst [vmem:[%s779_s13 + $0xc8] sm:$0xff] %v428_v40 }
 0x111   : > { %v617_v41 = vpop.f32.mrb[12].mxu0 }
 0x112   : > { %v633_v42 = vpop.f32.mrb[12].mxu1  ;;  %v385_v43 = vadd.f32 %v617_v41, %v772_v56  ;;  %v376_v45 = vpop.f32.mrb[13].mxu0 }
 0x113   : > { %v449_v44 = vadd.f32 %v633_v42, %v772_v56  ;;  %v440_v46 = vpop.f32.mrb[13].mxu1  ;;  %v377_v47 = vadd.f32 %v772_v56, %v376_v45  ;;  %v618_v49 = vpop.f32.mrb[14].mxu0 }
 0x114   : > { %v441_v48 = vadd.f32 %v772_v56, %v440_v46  ;;  %v634_v50 = vpop.f32.mrb[14].mxu1  ;;  %469 = vst [vmem:[%s779_s13 + $0x70] sm:$0xff] %v385_v43  ;;  %v388_v51 = vadd.f32 %v618_v49, %v772_v56  ;;  %v379_v53 = vpop.f32.mrb[15].mxu0 }
 0x115   : > { %485 = vst [vmem:[%s779_s13 + $0xf0] sm:$0xff] %v449_v44  ;;  %v452_v52 = vadd.f32 %v634_v50, %v772_v56  ;;  %v443_v54 = vpop.f32.mrb[15].mxu1  ;;  %467 = vst [vmem:[%s779_s13 + $0x60] sm:$0xff] %v377_v47  ;;  %v380_v55 = vadd.f32 %v772_v56, %v379_v53 }
 0x116   : > { %483 = vst [vmem:[%s779_s13 + $0xe0] sm:$0xff] %v441_v48  ;;  %v444_v57 = vadd.f32 %v772_v56, %v443_v54  ;;  %470 = vst [vmem:[%s779_s13 + $0x78] sm:$0xff] %v388_v51 }
 0x117   : > { %486 = vst [vmem:[%s779_s13 + $0xf8] sm:$0xff] %v452_v52  ;;  %468 = vst [vmem:[%s779_s13 + $0x68] sm:$0xff] %v380_v55 }
 0x118   : > { %484 = vst [vmem:[%s779_s13 + $0xe8] sm:$0xff] %v444_v57 }
 0x119 PF: > { %s13_s12 = sadd.s32 1, %s673_s12  }
 0x11a   : > { %p10_p4 = scmp.ge.s32.totalorder %s13_s12, 4  }
 0x11c   :  { %12 = sbr.rel (!%p10_p4) target bundleno = 1 (0x1), region = 62 }

// kernel: s4_model_forward.5
= control target key start
LH: loop header
LB: loop body
LE: loop exit
PB: predicated region body
PF: predicated region fallthrough
CT: control target
= control target key end

     0   :  { %s1876_s24 = smov 0   ;;  %s2708_s0 = inlined_call_operand.vmem [shape: f32[512,128], index: 0, kind: input, shape index: {}]   ;;  %s2709_s1 = inlined_call_operand.vmem [shape: f32[512,128], index: 1, kind: input, shape index: {}]   ;;  %s2710_s2 = inlined_call_operand.vmem [shape: f32[1,128], index: 2, kind: input, shape index: {}]   ;;  %s2711_s3 = inlined_call_operand.vmem [shape: bf16[128,128], index: 3, kind: input, shape index: {}]   ;;  %s2712_s4 = inlined_call_operand.vmem [shape: f32[1,128], index: 4, kind: input, shape index: {}]   ;;  %s2713_s5 = inlined_call_operand.vmem [shape: f32[1,128], index: 5, kind: input, shape index: {}]   ;;  %s2714_s6 = inlined_call_operand.vmem [shape: f32[1,128], index: 6, kind: input, shape index: {}]   ;;  %s2715_s7 = inlined_call_operand.vmem [shape: f32[512,128], index: 7, kind: output, shape index: {}]  }
   0x1 LB: > { %s1539_s25 = sadd.s32 4294967295, %s1834_s24   ;;  %p1543_p0 = scmp.ge.s32.totalorder %s1834_s24, 1  ;;  %s1834_s24 = sphi %s1876_s24, %s17_s24  }
   0x2   : > { %p249_p1 = scmp.lt.s32.totalorder %s1834_s24, 3 }
   0x4   : > { %p250_p2 = pnand %p1543_p0, %p249_p1 }
   0x5   : > { %v1660_v0 = vld [vmem:[%s2711_s3] sm:$0xff] (!%p250_p2)   ;;  %s1544_s28 = sshll.u32 (!%p250_p2), %s1539_s25, 5  ;;  %v1661_v1 = vld [vmem:[%s2711_s3 + $0x8] sm:$0xff] (!%p250_p2)   ;;  %v1662_v2 = vld [vmem:[%s2711_s3 + $0x10] sm:$0xff] (!%p250_p2)  }
   0x6   : > { %253 = sbr.rel (%p250_p2) target bundleno = 662 (0x296), region = 48  ;;  %p287_p3 = scmp.lt.s32.totalorder (!%p250_p2), %s1544_s28, 63  ;;  %1588 = vmatprep.subr.bf16.mxu0 (!%p250_p2), %v1660_v0  ;;  %1636 = vmatprep.subr.bf16.mxu1 (!%p250_p2), %v1660_v0  ;;  %v1663_v3 = vld [vmem:[%s2711_s3 + $0x18] sm:$0xff] (!%p250_p2)   ;;  %v1917_v8 = vld [vmem:[%s2710_s2] ss:$0 sm:$0xff] (!%p250_p2)  ;;  %v1665_v34 = vld [vmem:[%s2711_s3 + $0x28] sm:$0xff] (!%p250_p2)  }
   0x7   : > { %1589 = vmatpush3.bf16.msra.mxu0 (!%p250_p2), %v1660_v0  ;;  %1644 = vmatpush3.bf16.msra.mxu1 (!%p250_p2), %v1660_v0  ;;  %v1664_v19 = vld [vmem:[%s2711_s3 + $0x20] sm:$0xff] (!%p250_p2)   ;;  %v1666_v51 = vld [vmem:[%s2711_s3 + $0x30] sm:$0xff] (!%p250_p2)  }
   0x8   : > { %1590 = vmatprep.subr.bf16.mxu0 (!%p250_p2), %v1661_v1  ;;  %1637 = vmatprep.subr.bf16.mxu1 (!%p250_p2), %v1661_v1 }
   0xb   : > { %1591 = vmatpush3.bf16.msra.mxu0 (!%p250_p2), %v1661_v1  ;;  %1645 = vmatpush3.bf16.msra.mxu1 (!%p250_p2), %v1661_v1 }
   0xc   : > { %1592 = vmatprep.subr.bf16.mxu0 (!%p250_p2), %v1662_v2  ;;  %1638 = vmatprep.subr.bf16.mxu1 (!%p250_p2), %v1662_v2 }
   0xd   : > { %s2717_s28 = smov (!%p287_p3, %s1544_s28), 63 }
   0xe   : > { %s1893_s10 = sshll.u32 %s2717_s28, 3 }
   0xf   : > { %s1899_s13 = scalar_lea.vmem %s2708_s0, %s1893_s10  ;;  %s1905_s16 = scalar_lea.vmem %s2709_s1, %s1893_s10  ;;  %1593 = vmatpush3.bf16.msra.mxu0 %v1662_v2  ;;  %1646 = vmatpush3.bf16.msra.mxu1 %v1662_v2 }
  0x10   : > { %v305_v4 = vld [vmem:[%s1905_s16] sm:$0xff]  ;;  %v306_v5 = vld [vmem:[%s1905_s16 + $0x8] sm:$0xff]  ;;  %v307_v17 = vld [vmem:[%s1905_s16 + $0x10] sm:$0xff]  ;;  %1594 = vmatprep.subr.bf16.mxu0 %v1663_v3  ;;  %1639 = vmatprep.subr.bf16.mxu1 %v1663_v3  ;;  %s2547_s17 = scalar_lea.vmem %s2715_s7, %s1893_s10 }
  0x11   : > { %v337_v6 = vld [vmem:[%s1899_s13] sm:$0xff]  ;;  %v338_v7 = vld [vmem:[%s1899_s13 + $0x8] sm:$0xff]  ;;  %v376_v10 = vmul.f32 %v1917_v8, %v305_v4  ;;  %v377_v11 = vmul.f32 %v1917_v8, %v306_v5  ;;  %v308_v18 = vld [vmem:[%s1905_s16 + $0x18] sm:$0xff]  ;;  %v378_v25 = vmul.f32 %v1917_v8, %v307_v17 }
  0x12   : > { %v321_v9 = vld [vmem:[%s1905_s16 + $0x80] sm:$0xff]  ;;  %v322_v12 = vld [vmem:[%s1905_s16 + $0x88] sm:$0xff]  ;;  %v339_v24 = vld [vmem:[%s1899_s13 + $0x10] sm:$0xff]  ;;  %v379_v26 = vmul.f32 %v1917_v8, %v308_v18 }
  0x13   : > { %v353_v13 = vld [vmem:[%s1899_s13 + $0x80] sm:$0xff]  ;;  %v354_v14 = vld [vmem:[%s1899_s13 + $0x88] sm:$0xff]  ;;  %v392_v15 = vmul.f32 %v1917_v8, %v321_v9  ;;  %v393_v16 = vmul.f32 %v1917_v8, %v322_v12  ;;  %v408_v20 = vadd.f32 %v376_v10, %v337_v6  ;;  %v1932_v21 = vadd.f32 %v377_v11, %v338_v7  ;;  %v340_v29 = vld [vmem:[%s1899_s13 + $0x18] sm:$0xff]  ;;  %1595 = vmatpush3.bf16.msra.mxu0 %v1663_v3 }
  0x14   : > { %v323_v30 = vld [vmem:[%s1905_s16 + $0x90] sm:$0xff]  ;;  %1647 = vmatpush3.bf16.msra.mxu1 %v1663_v3  ;;  %v324_v33 = vld [vmem:[%s1905_s16 + $0x98] sm:$0xff]  ;;  %1596 = vmatprep.subr.bf16.mxu0 %v1664_v19  ;;  %v1951_v37 = vadd.f32 %v378_v25, %v339_v24  ;;  %v1955_v40 = vadd.f32 %v379_v26, %v340_v29  ;;  %v309_v63 = vld [vmem:[%s1905_s16 + $0x20] sm:$0xff] }
  0x15   : > { %v1934_v22 = vadd.f32 %v392_v15, %v353_v13  ;;  %v1936_v23 = vadd.f32 %v393_v16, %v354_v14  ;;  %v472_v27 = vmul.f32 0.044715, %v408_v20  ;;  %v473_v28 = vmul.f32 0.044715, %v1932_v21  ;;  %1640 = vmatprep.subr.bf16.mxu1 %v1664_v19  ;;  %v355_v45 = vld [vmem:[%s1899_s13 + $0x90] sm:$0xff]  ;;  %v356_v50 = vld [vmem:[%s1899_s13 + $0x98] sm:$0xff] }
  0x16   : > { %v394_v41 = vmul.f32 %v1917_v8, %v323_v30  ;;  %v474_v44 = vmul.f32 0.044715, %v1951_v37  ;;  %v395_v46 = vmul.f32 %v1917_v8, %v324_v33  ;;  %v475_v49 = vmul.f32 0.044715, %v1955_v40  ;;  %v310_v3 = vld [vmem:[%s1905_s16 + $0x28] sm:$0xff]  ;;  %v1667_v4 = vld [vmem:[%s2711_s3 + $0x38] sm:$0xff]  }
  0x17   : > { %v488_v31 = vmul.f32 0.044715, %v1934_v22  ;;  %v489_v32 = vmul.f32 0.044715, %v1936_v23  ;;  %v504_v35 = vmul.f32 %v472_v27, %v408_v20  ;;  %v505_v36 = vmul.f32 %v473_v28, %v1932_v21  ;;  %1597 = vmatpush3.bf16.msra.mxu0 %v1664_v19  ;;  %v341_v9 = vld [vmem:[%s1899_s13 + $0x20] sm:$0xff]  ;;  %v342_v12 = vld [vmem:[%s1899_s13 + $0x28] sm:$0xff] }
  0x18   : > { %1648 = vmatpush3.bf16.msra.mxu1 %v1664_v19  ;;  %1598 = vmatprep.subr.bf16.mxu0 %v1665_v34  ;;  %v506_v54 = vmul.f32 %v474_v44, %v1951_v37  ;;  %v507_v57 = vmul.f32 %v475_v49, %v1955_v40  ;;  %v1974_v58 = vadd.f32 %v394_v41, %v355_v45  ;;  %v1985_v5 = vmul.f32 0.5, %v408_v20  ;;  %v311_v14 = vld [vmem:[%s1905_s16 + $0x30] sm:$0xff]  ;;  %v312_v24 = vld [vmem:[%s1905_s16 + $0x38] sm:$0xff]  ;;  %v326_v49 = vld [vmem:[%s1905_s16 + $0xa8] sm:$0xff] }
  0x19   : > { %v520_v38 = vmul.f32 %v488_v31, %v1934_v22  ;;  %v521_v39 = vmul.f32 %v489_v32, %v1936_v23  ;;  %v536_v42 = vmul.f32 %v504_v35, %v408_v20  ;;  %v537_v43 = vmul.f32 %v505_v36, %v1932_v21  ;;  %1641 = vmatprep.subr.bf16.mxu1 %v1665_v34  ;;  %v343_v27 = vld [vmem:[%s1899_s13 + $0x30] sm:$0xff]  ;;  %v344_v32 = vld [vmem:[%s1899_s13 + $0x38] sm:$0xff] }
  0x1a   : > { %v538_v61 = vmul.f32 %v506_v54, %v1951_v37  ;;  %v1977_v62 = vadd.f32 %v395_v46, %v356_v50  ;;  %v539_v2 = vmul.f32 %v507_v57, %v1955_v40  ;;  %v490_v7 = vmul.f32 0.044715, %v1974_v58 }
  0x1b   : > { %v552_v47 = vmul.f32 %v520_v38, %v1934_v22  ;;  %v553_v48 = vmul.f32 %v521_v39, %v1936_v23  ;;  %v568_v52 = vadd.f32 %v536_v42, %v408_v20  ;;  %v569_v53 = vadd.f32 %v537_v43, %v1932_v21  ;;  %1599 = vmatpush3.bf16.msra.mxu0 %v1665_v34  ;;  %v325_v42 = vld [vmem:[%s1905_s16 + $0xa0] sm:$0xff] }
  0x1c   : > { %1649 = vmatpush3.bf16.msra.mxu1 %v1665_v34  ;;  %1600 = vmatprep.subr.bf16.mxu0 %v1666_v51  ;;  %v570_v6 = vadd.f32 %v538_v61, %v1951_v37  ;;  %v571_v10 = vadd.f32 %v539_v2, %v1955_v40  ;;  %v491_v11 = vmul.f32 0.044715, %v1977_v62  ;;  %v380_v13 = vmul.f32 %v1917_v8, %v309_v63 }
  0x1d   : > { %v584_v55 = vadd.f32 %v552_v47, %v1934_v22  ;;  %v585_v56 = vadd.f32 %v553_v48, %v1936_v23  ;;  %v600_v59 = vmul.f32 0.7978846, %v568_v52  ;;  %v601_v60 = vmul.f32 0.7978846, %v569_v53  ;;  %1642 = vmatprep.subr.bf16.mxu1 %v1666_v51 }
  0x1e   : > { %v602_v15 = vmul.f32 0.7978846, %v570_v6  ;;  %v522_v16 = vmul.f32 %v490_v7, %v1974_v58  ;;  %v381_v17 = vmul.f32 %v1917_v8, %v310_v3  ;;  %v603_v18 = vmul.f32 0.7978846, %v571_v10 }
  0x1f   : > { %v616_v0 = vmul.f32 0.7978846, %v584_v55  ;;  %v617_v1 = vmul.f32 0.7978846, %v585_v56  ;;  %1668 = vtanh.f32 %v600_v59  ;;  %1601 = vmatpush3.bf16.msra.mxu0 %v1666_v51  ;;  %v523_v19 = vmul.f32 %v491_v11, %v1977_v62  ;;  %v357_v11 = vld [vmem:[%s1899_s13 + $0xa0] sm:$0xff] }
  0x20   : > { %1670 = vtanh.f32 %v601_v60  ;;  %1650 = vmatpush3.bf16.msra.mxu1 %v1666_v51  ;;  %v1998_v20 = vadd.f32 %v380_v13, %v341_v9  ;;  %1602 = vmatprep.subr.bf16.mxu0 %v1667_v4  ;;  %v554_v25 = vmul.f32 %v522_v16, %v1974_v58  ;;  %v2002_v26 = vadd.f32 %v381_v17, %v342_v12  ;;  %v327_v16 = vld [vmem:[%s1905_s16 + $0xb0] sm:$0xff] }
  0x21   : > { %1672 = vtanh.f32 %v616_v0  ;;  %1643 = vmatprep.subr.bf16.mxu1 %v1667_v4  ;;  %v382_v28 = vmul.f32 %v1917_v8, %v311_v14  ;;  %v441_v29 = vmul.f32 0.5, %v1932_v21  ;;  %v555_v30 = vmul.f32 %v523_v19, %v1977_v62 }
  0x22   : > { %1674 = vtanh.f32 %v617_v1  ;;  %v476_v31 = vmul.f32 0.044715, %v1998_v20  ;;  %v456_v33 = vmul.f32 0.5, %v1934_v22  ;;  %v586_v34 = vadd.f32 %v554_v25, %v1974_v58 }
  0x23   : > { %1676 = vtanh.f32 %v602_v15  ;;  %v477_v35 = vmul.f32 0.044715, %v2002_v26  ;;  %v383_v36 = vmul.f32 %v1917_v8, %v312_v24  ;;  %1603 = vmatpush3.bf16.msra.mxu0 %v1667_v4  ;;  %v457_v38 = vmul.f32 0.5, %v1936_v23 }
  0x24   : > { %1678 = vtanh.f32 %v603_v18  ;;  %1651 = vmatpush3.bf16.msra.mxu1 %v1667_v4  ;;  %v587_v21 = vadd.f32 %v555_v30, %v1977_v62  ;;  %v508_v39 = vmul.f32 %v476_v31, %v1998_v20  ;;  %v2017_v41 = vadd.f32 %v382_v28, %v343_v27 }
  0x25   : > { %v442_v22 = vmul.f32 0.5, %v1951_v37  ;;  %v618_v43 = vmul.f32 0.7978846, %v586_v34  ;;  %v509_v44 = vmul.f32 %v477_v35, %v2002_v26  ;;  %v2022_v45 = vadd.f32 %v383_v36, %v344_v32  ;;  %v360_v34 = vld [vmem:[%s1899_s13 + $0xb8] sm:$0xff] }
  0x26   : > { %v443_v46 = vmul.f32 0.5, %v1955_v40  ;;  %v619_v47 = vmul.f32 0.7978846, %v587_v21  ;;  %v540_v48 = vmul.f32 %v508_v39, %v1998_v20  ;;  %v478_v23 = vmul.f32 0.044715, %v2017_v41  ;;  %v313_v39 = vld [vmem:[%s1905_s16 + $0x40] sm:$0xff] }
  0x27   : > { %1680 = vtanh.f32 %v618_v43  ;;  %v541_v51 = vmul.f32 %v509_v44, %v2002_v26  ;;  %v479_v52 = vmul.f32 0.044715, %v2022_v45  ;;  %v396_v37 = vmul.f32 %v1917_v8, %v325_v42 }
  0x28   : > { %1682 = vtanh.f32 %v619_v47  ;;  %v572_v55 = vadd.f32 %v540_v48, %v1998_v20  ;;  %v510_v40 = vmul.f32 %v478_v23, %v2017_v41  ;;  %v397_v61 = vmul.f32 %v1917_v8, %v326_v49 }
  0x29   : > { %v1669_v50 = vpop.eup %1668  ;;  %v573_v59 = vadd.f32 %v541_v51, %v2002_v26  ;;  %v511_v60 = vmul.f32 %v479_v52, %v2022_v45  ;;  %v2044_v28 = vadd.f32 %v396_v37, %v357_v11  ;;  %v398_v35 = vmul.f32 %v1917_v8, %v327_v16  ;;  %v314_v52 = vld [vmem:[%s1905_s16 + $0x48] sm:$0xff]  ;;  %v315_v16 = vld [vmem:[%s1905_s16 + $0x50] sm:$0xff] }
  0x2a   : > { %v1671_v53 = vpop.eup %1670  ;;  %v664_v54 = vadd.f32 1.0, %v1669_v50  ;;  %v604_v2 = vmul.f32 0.7978846, %v572_v55  ;;  %v542_v3 = vmul.f32 %v510_v40, %v2017_v41  ;;  %v458_v36 = vmul.f32 0.5, %v1974_v58 }
  0x2b   : > { %v1673_v56 = vpop.eup %1672  ;;  %v665_v57 = vadd.f32 1.0, %v1671_v53  ;;  %v605_v9 = vmul.f32 0.7978846, %v573_v59  ;;  %v543_v10 = vmul.f32 %v511_v60, %v2022_v45  ;;  %v492_v21 = vmul.f32 0.044715, %v2044_v28 }
  0x2c   : > { %v1675_v63 = vpop.eup %1674  ;;  %v696_v0 = vmul.f32 %v664_v54, %v1985_v5  ;;  %v680_v1 = vadd.f32 1.0, %v1673_v56  ;;  %1684 = vtanh.f32 %v604_v2  ;;  %v574_v15 = vadd.f32 %v542_v3, %v2017_v41  ;;  %v358_v5 = vld [vmem:[%s1899_s13 + $0xa8] sm:$0xff] }
  0x2d   : > { %v1677_v4 = vpop.eup %1676  ;;  %v697_v6 = vmul.f32 %v665_v57, %v441_v29  ;;  %v681_v7 = vadd.f32 1.0, %v1675_v63  ;;  %1686 = vtanh.f32 %v605_v9  ;;  %v575_v25 = vadd.f32 %v543_v10, %v2022_v45  ;;  %v328_v29 = vld [vmem:[%s1905_s16 + $0xb8] sm:$0xff] }
  0x2e   : > { %v1679_v12 = vpop.eup %1678  ;;  %v712_v13 = vmul.f32 %v680_v1, %v456_v33  ;;  %v666_v14 = vadd.f32 1.0, %v1677_v4  ;;  %v606_v27 = vmul.f32 0.7978846, %v574_v15  ;;  %v2047_v32 = vadd.f32 %v397_v61, %v358_v5  ;;  %v359_v33 = vld [vmem:[%s1899_s13 + $0xb0] sm:$0xff]  ;;  %v346_v61 = vld [vmem:[%s1899_s13 + $0x48] sm:$0xff] }
  0x2f   : > { %v728_v17 = vpack.c.bf16 %v697_v6, %v696_v0  ;;  %v713_v18 = vmul.f32 %v681_v7, %v457_v38  ;;  %v667_v19 = vadd.f32 1.0, %v1679_v12  ;;  %v607_v38 = vmul.f32 0.7978846, %v575_v25 }
  0x30   : > { %v698_v24 = vmul.f32 %v666_v14, %v442_v22  ;;  %1688 = vtanh.f32 %v606_v27  ;;  %v459_v43 = vmul.f32 0.5, %v1977_v62  ;;  %v493_v44 = vmul.f32 0.044715, %v2047_v32  ;;  %v345_v62 = vld [vmem:[%s1899_s13 + $0x40] sm:$0xff] }
  0x31   : > { %1604 = vmatprep.mubr.bf16.mxu0 %v728_v17  ;;  %v736_v30 = vpack.c.bf16 %v713_v18, %v712_v13  ;;  %v699_v31 = vmul.f32 %v667_v19, %v443_v46  ;;  %v1681_v42 = vpop.eup %1680  ;;  %v399_v46 = vmul.f32 %v1917_v8, %v328_v29  ;;  %1690 = vtanh.f32 %v607_v38 }
  0x32   : > { %v1683_v47 = vpop.eup %1682  ;;  %v682_v48 = vadd.f32 1.0, %v1681_v42  ;;  %v524_v58 = vmul.f32 %v492_v21, %v2044_v28  ;;  %v2059_v23 = vadd.f32 %v398_v35, %v359_v33  ;;  %v525_v50 = vmul.f32 %v493_v44, %v2047_v32 }
  0x33   : > { %1620 = vmatprep.mubr.bf16.mxu1 %v736_v30  ;;  %v729_v22 = vpack.c.bf16 %v699_v31, %v698_v24  ;;  %v683_v49 = vadd.f32 1.0, %v1683_v47  ;;  %v2062_v51 = vadd.f32 %v399_v46, %v360_v34  ;;  %v384_v37 = vmul.f32 %v1917_v8, %v313_v39  ;;  %v347_v30 = vld [vmem:[%s1899_s13 + $0x50] sm:$0xff]  ;;  %v330_v47 = vld [vmem:[%s1905_s16 + $0xc8] sm:$0xff] }
  0x34   : > { %v714_v53 = vmul.f32 %v682_v48, %v458_v36  ;;  %v444_v54 = vmul.f32 0.5, %v1998_v20  ;;  %v556_v55 = vmul.f32 %v524_v58, %v2044_v28  ;;  %v494_v40 = vmul.f32 0.044715, %v2059_v23  ;;  %v329_v36 = vld [vmem:[%s1905_s16 + $0xc0] sm:$0xff] }
  0x35   : > { %1605 = vmatmul.mubr.bf16.vlgmr.msra.gmra.mrb[0].mxu0 %v729_v22  ;;  %v715_v56 = vmul.f32 %v683_v49, %v459_v43  ;;  %v445_v57 = vmul.f32 0.5, %v2002_v26  ;;  %v557_v59 = vmul.f32 %v525_v50, %v2047_v32  ;;  %v495_v60 = vmul.f32 0.044715, %v2062_v51  ;;  %v348_v22 = vld [vmem:[%s1899_s13 + $0x58] sm:$0xff]  ;;  %v361_v48 = vld [vmem:[%s1899_s13 + $0xc0] sm:$0xff] }
  0x36   : > { %v1685_v63 = vpop.eup %1684  ;;  %v588_v0 = vadd.f32 %v556_v55, %v2044_v28  ;;  %v526_v1 = vmul.f32 %v494_v40, %v2059_v23  ;;  %v385_v2 = vmul.f32 %v1917_v8, %v314_v52  ;;  %v2077_v20 = vadd.f32 %v384_v37, %v345_v62 }
  0x37   : > { %v1687_v3 = vpop.eup %1686  ;;  %v737_v4 = vpack.c.bf16 %v715_v56, %v714_v53  ;;  %v668_v6 = vadd.f32 1.0, %v1685_v63  ;;  %v589_v26 = vadd.f32 %v557_v59, %v2047_v32  ;;  %v527_v7 = vmul.f32 %v495_v60, %v2062_v51  ;;  %v331_v59 = vld [vmem:[%s1905_s16 + $0xd0] sm:$0xff] }
  0x38   : > { %v669_v9 = vadd.f32 1.0, %v1687_v3  ;;  %v620_v10 = vmul.f32 0.7978846, %v588_v0  ;;  %v558_v11 = vmul.f32 %v526_v1, %v2059_v23  ;;  %v2082_v12 = vadd.f32 %v385_v2, %v346_v61 }
  0x39   : > { %1621 = vmatmul.mubr.bf16.vlgmr.msra.gmra.mrb[0].mxu1 %v737_v4  ;;  %v700_v13 = vmul.f32 %v668_v6, %v444_v54  ;;  %v446_v14 = vmul.f32 0.5, %v2017_v41  ;;  %v621_v15 = vmul.f32 0.7978846, %v589_v26  ;;  %v559_v5 = vmul.f32 %v527_v7, %v2062_v51  ;;  %v316_v41 = vld [vmem:[%s1905_s16 + $0x58] sm:$0xff]  ;;  %v362_v54 = vld [vmem:[%s1899_s13 + $0xc8] sm:$0xff] }
  0x3a   : > { %v1689_v17 = vpop.eup %1688  ;;  %v701_v18 = vmul.f32 %v669_v9, %v445_v57  ;;  %v447_v19 = vmul.f32 0.5, %v2022_v45  ;;  %1692 = vtanh.f32 %v620_v10  ;;  %v590_v24 = vadd.f32 %v558_v11, %v2059_v23  ;;  %v332_v7 = vld [vmem:[%s1905_s16 + $0xd8] sm:$0xff] }
  0x3b   : > { %v670_v25 = vadd.f32 1.0, %v1689_v17  ;;  %1694 = vtanh.f32 %v621_v15  ;;  %v591_v27 = vadd.f32 %v559_v5, %v2062_v51  ;;  %v480_v29 = vmul.f32 0.044715, %v2077_v20  ;;  %v1691_v31 = vpop.eup %1690  ;;  %v364_v17 = vld [vmem:[%s1899_s13 + $0xd8] sm:$0xff] }
  0x3c   : > { %v730_v33 = vpack.c.bf16 %v701_v18, %v700_v13  ;;  %v622_v34 = vmul.f32 0.7978846, %v590_v24  ;;  %v481_v35 = vmul.f32 0.044715, %v2082_v12  ;;  %v386_v45 = vmul.f32 %v1917_v8, %v315_v16 }
  0x3d   : > { %v671_v38 = vadd.f32 1.0, %v1691_v31  ;;  %v702_v21 = vmul.f32 %v670_v25, %v446_v14  ;;  %v623_v39 = vmul.f32 0.7978846, %v591_v27  ;;  %v512_v42 = vmul.f32 %v480_v29, %v2077_v20  ;;  %v363_v14 = vld [vmem:[%s1899_s13 + $0xd0] sm:$0xff] }
  0x3e   : > { %1608 = vmatprep.mubr.bf16.mxu0 %v730_v33  ;;  %1696 = vtanh.f32 %v622_v34  ;;  %v513_v43 = vmul.f32 %v481_v35, %v2082_v12  ;;  %v387_v44 = vmul.f32 %v1917_v8, %v316_v41  ;;  %v2100_v46 = vadd.f32 %v386_v45, %v347_v30 }
  0x3f   : > { %v703_v58 = vmul.f32 %v671_v38, %v447_v19  ;;  %1698 = vtanh.f32 %v623_v39  ;;  %v544_v49 = vmul.f32 %v512_v42, %v2077_v20  ;;  %v400_v50 = vmul.f32 %v1917_v8, %v329_v36  ;;  %v317_v39 = vld [vmem:[%s1905_s16 + $0x60] sm:$0xff] }
  0x40   : > { %v460_v52 = vmul.f32 0.5, %v2044_v28  ;;  %v545_v62 = vmul.f32 %v513_v43, %v2082_v12  ;;  %v2108_v37 = vadd.f32 %v387_v44, %v348_v22  ;;  %v482_v53 = vmul.f32 0.044715, %v2100_v46 }
  0x41   : > { %v731_v55 = vpack.c.bf16 %v703_v58, %v702_v21  ;;  %v576_v40 = vadd.f32 %v544_v49, %v2077_v20  ;;  %v401_v56 = vmul.f32 %v1917_v8, %v330_v47  ;;  %v2114_v57 = vadd.f32 %v400_v50, %v361_v48  ;;  %v318_v47 = vld [vmem:[%s1905_s16 + $0x68] sm:$0xff]  ;;  %v319_v48 = vld [vmem:[%s1905_s16 + $0x70] sm:$0xff] }
  0x42   : > { %v461_v60 = vmul.f32 0.5, %v2047_v32  ;;  %v577_v28 = vadd.f32 %v545_v62, %v2082_v12  ;;  %v483_v61 = vmul.f32 0.044715, %v2108_v37  ;;  %v514_v63 = vmul.f32 %v482_v53, %v2100_v46  ;;  %v350_v62 = vld [vmem:[%s1899_s13 + $0x68] sm:$0xff]  ;;  %v320_v53 = vld [vmem:[%s1905_s16 + $0x78] sm:$0xff] }
  0x43   : > { %1609 = vmatmul.mubr.bf16.gmra.mrb[4].mxu0 %v731_v55  ;;  %v462_v0 = vmul.f32 0.5, %v2059_v23  ;;  %v608_v1 = vmul.f32 0.7978846, %v576_v40  ;;  %v2122_v2 = vadd.f32 %v401_v56, %v362_v54  ;;  %v496_v3 = vmul.f32 0.044715, %v2114_v57 }
  0x44   : > { %v1693_v4 = vpop.eup %1692  ;;  %v609_v6 = vmul.f32 0.7978846, %v577_v28  ;;  %v515_v32 = vmul.f32 %v483_v61, %v2108_v37  ;;  %v546_v26 = vmul.f32 %v514_v63, %v2100_v46  ;;  %v402_v9 = vmul.f32 %v1917_v8, %v331_v59 }
  0x45   : > { %v1695_v10 = vpop.eup %1694  ;;  %v684_v11 = vadd.f32 1.0, %v1693_v4  ;;  %v463_v13 = vmul.f32 0.5, %v2062_v51  ;;  %1700 = vtanh.f32 %v608_v1  ;;  %v497_v23 = vmul.f32 0.044715, %v2122_v2 }
  0x46   : > { %v685_v15 = vadd.f32 1.0, %v1695_v10  ;;  %1702 = vtanh.f32 %v609_v6  ;;  %v547_v5 = vmul.f32 %v515_v32, %v2108_v37  ;;  %v578_v16 = vadd.f32 %v546_v26, %v2100_v46  ;;  %v351_v32 = vld [vmem:[%s1899_s13 + $0x70] sm:$0xff] }
  0x47   : > { %v716_v18 = vmul.f32 %v684_v11, %v460_v52  ;;  %v528_v19 = vmul.f32 %v496_v3, %v2114_v57  ;;  %v529_v24 = vmul.f32 %v497_v23, %v2122_v2  ;;  %v403_v25 = vmul.f32 %v1917_v8, %v332_v7  ;;  %v349_v52 = vld [vmem:[%s1899_s13 + $0x60] sm:$0xff]  ;;  %v352_v11 = vld [vmem:[%s1899_s13 + $0x78] sm:$0xff] }
  0x48   : > { %v1697_v51 = vpop.eup %1696  ;;  %v717_v27 = vmul.f32 %v685_v15, %v461_v60  ;;  %v579_v29 = vadd.f32 %v547_v5, %v2108_v37  ;;  %v610_v41 = vmul.f32 0.7978846, %v578_v16  ;;  %v2139_v30 = vadd.f32 %v402_v9, %v363_v14 }
  0x49   : > { %v1699_v31 = vpop.eup %1698  ;;  %v686_v33 = vadd.f32 1.0, %v1697_v51  ;;  %v560_v34 = vmul.f32 %v528_v19, %v2114_v57  ;;  %v561_v35 = vmul.f32 %v529_v24, %v2122_v2  ;;  %v2143_v45 = vadd.f32 %v403_v25, %v364_v17 }
  0x4a   : > { %v738_v36 = vpack.c.bf16 %v717_v27, %v716_v18  ;;  %v687_v38 = vadd.f32 1.0, %v1699_v31  ;;  %v611_v21 = vmul.f32 0.7978846, %v579_v29  ;;  %1704 = vtanh.f32 %v610_v41 }
  0x4b   : > { %v718_v42 = vmul.f32 %v686_v33, %v462_v0  ;;  %v448_v22 = vmul.f32 0.5, %v2077_v20  ;;  %v592_v43 = vadd.f32 %v560_v34, %v2114_v57  ;;  %v593_v44 = vadd.f32 %v561_v35, %v2122_v2  ;;  %v334_v33 = vld [vmem:[%s1905_s16 + $0xe8] sm:$0xff] }
  0x4c   : > { %1624 = vmatprep.mubr.bf16.mxu1 %v738_v36  ;;  %v719_v58 = vmul.f32 %v687_v38, %v463_v13  ;;  %v449_v49 = vmul.f32 0.5, %v2082_v12  ;;  %1706 = vtanh.f32 %v611_v21  ;;  %v498_v50 = vmul.f32 0.044715, %v2139_v30  ;;  %v333_v13 = vld [vmem:[%s1905_s16 + $0xe0] sm:$0xff] }
  0x4d   : > { %v624_v54 = vmul.f32 0.7978846, %v592_v43  ;;  %v625_v55 = vmul.f32 0.7978846, %v593_v44  ;;  %v499_v20 = vmul.f32 0.044715, %v2143_v45  ;;  %v388_v40 = vmul.f32 %v1917_v8, %v317_v39 }
  0x4e   : > { %v739_v56 = vpack.c.bf16 %v719_v58, %v718_v42  ;;  %v530_v59 = vmul.f32 %v498_v50, %v2139_v30  ;;  %v389_v60 = vmul.f32 %v1917_v8, %v318_v47  ;;  %v390_v12 = vmul.f32 %v1917_v8, %v319_v48  ;;  %v365_v21 = vld [vmem:[%s1899_s13 + $0xe0] sm:$0xff]  ;;  %v335_v39 = vld [vmem:[%s1905_s16 + $0xf0] sm:$0xff] }
  0x4f   : > { %v1701_v28 = vpop.eup %1700  ;;  %1708 = vtanh.f32 %v624_v54  ;;  %v531_v61 = vmul.f32 %v499_v20, %v2143_v45  ;;  %v2162_v63 = vadd.f32 %v388_v40, %v349_v52  ;;  %v391_v0 = vmul.f32 %v1917_v8, %v320_v53 }
  0x50   : > { %v1703_v1 = vpop.eup %1702  ;;  %1625 = vmatmul.mubr.bf16.gmra.mrb[4].mxu1 %v739_v56  ;;  %v672_v3 = vadd.f32 1.0, %v1701_v28  ;;  %1710 = vtanh.f32 %v625_v55  ;;  %v562_v4 = vmul.f32 %v530_v59, %v2139_v30  ;;  %v2166_v6 = vadd.f32 %v389_v60, %v350_v62 }
  0x51   : > { %v673_v26 = vadd.f32 1.0, %v1703_v1  ;;  %v450_v7 = vmul.f32 0.5, %v2100_v46  ;;  %v563_v9 = vmul.f32 %v531_v61, %v2143_v45  ;;  %v484_v10 = vmul.f32 0.044715, %v2162_v63  ;;  %v367_v1 = vld [vmem:[%s1899_s13 + $0xf0] sm:$0xff] }
  0x52   : > { %v704_v23 = vmul.f32 %v672_v3, %v448_v22  ;;  %v451_v14 = vmul.f32 0.5, %v2108_v37  ;;  %v594_v15 = vadd.f32 %v562_v4, %v2139_v30  ;;  %v485_v5 = vmul.f32 0.044715, %v2166_v6 }
  0x53   : > { %v705_v16 = vmul.f32 %v673_v26, %v449_v49  ;;  %v595_v17 = vadd.f32 %v563_v9, %v2143_v45  ;;  %v516_v18 = vmul.f32 %v484_v10, %v2162_v63  ;;  %v2179_v46 = vadd.f32 %v390_v12, %v351_v32  ;;  %v336_v12 = vld [vmem:[%s1905_s16 + $0xf8] sm:$0xff] }
  0x54   : > { %v1705_v19 = vpop.eup %1704  ;;  %v626_v24 = vmul.f32 0.7978846, %v594_v15  ;;  %v517_v25 = vmul.f32 %v485_v5, %v2166_v6  ;;  %v2182_v51 = vadd.f32 %v391_v0, %v352_v11  ;;  %v404_v37 = vmul.f32 %v1917_v8, %v333_v13  ;;  %v368_v26 = vld [vmem:[%s1899_s13 + $0xf8] sm:$0xff] }
  0x55   : > { %v732_v27 = vpack.c.bf16 %v705_v16, %v704_v23  ;;  %v674_v29 = vadd.f32 1.0, %v1705_v19  ;;  %v627_v41 = vmul.f32 0.7978846, %v595_v17  ;;  %v548_v31 = vmul.f32 %v516_v18, %v2162_v63 }
  0x56   : > { %v1707_v34 = vpop.eup %1706  ;;  %v464_v35 = vmul.f32 0.5, %v2114_v57  ;;  %v465_v36 = vmul.f32 0.5, %v2122_v2  ;;  %1712 = vtanh.f32 %v626_v24  ;;  %v549_v38 = vmul.f32 %v517_v25, %v2166_v6  ;;  %v366_v57 = vld [vmem:[%s1899_s13 + $0xe8] sm:$0xff] }
  0x57   : > { %1612 = vmatprep.mubr.bf16.mxu0 %v732_v27  ;;  %v675_v42 = vadd.f32 1.0, %v1707_v34  ;;  %v706_v22 = vmul.f32 %v674_v29, %v450_v7  ;;  %1714 = vtanh.f32 %v627_v41  ;;  %v580_v43 = vadd.f32 %v548_v31, %v2162_v63 }
  0x58   : > { %v581_v44 = vadd.f32 %v549_v38, %v2166_v6  ;;  %v486_v47 = vmul.f32 0.044715, %v2179_v46  ;;  %v487_v48 = vmul.f32 0.044715, %v2182_v51  ;;  %v405_v2 = vmul.f32 %v1917_v8, %v334_v33 }
  0x59   : > { %v1709_v58 = vpop.eup %1708  ;;  %v707_v49 = vmul.f32 %v675_v42, %v451_v14  ;;  %v612_v50 = vmul.f32 0.7978846, %v580_v43  ;;  %v2198_v52 = vadd.f32 %v404_v37, %v365_v21  ;;  %v406_v62 = vmul.f32 %v1917_v8, %v335_v39 }
  0x5a   : > { %v1711_v53 = vpop.eup %1710  ;;  %v688_v54 = vadd.f32 1.0, %v1709_v58  ;;  %v613_v55 = vmul.f32 0.7978846, %v581_v44  ;;  %v518_v20 = vmul.f32 %v486_v47, %v2179_v46  ;;  %v519_v40 = vmul.f32 %v487_v48, %v2182_v51 }
  0x5b   : > { %v733_v56 = vpack.c.bf16 %v707_v49, %v706_v22  ;;  %v689_v59 = vadd.f32 1.0, %v1711_v53  ;;  %1716 = vtanh.f32 %v612_v50  ;;  %v2203_v60 = vadd.f32 %v405_v2, %v366_v57 }
  0x5c   : > { %v720_v28 = vmul.f32 %v688_v54, %v464_v35  ;;  %1718 = vtanh.f32 %v613_v55  ;;  %v550_v61 = vmul.f32 %v518_v20, %v2179_v46  ;;  %v551_v0 = vmul.f32 %v519_v40, %v2182_v51 }
  0x5d   : > { %1613 = vmatmul.mubr.bf16.gmra.mrb[8].mxu0 %v733_v56  ;;  %v721_v3 = vmul.f32 %v689_v59, %v465_v36  ;;  %v466_v4 = vmul.f32 0.5, %v2139_v30  ;;  %v500_v32 = vmul.f32 0.044715, %v2198_v52  ;;  %v501_v10 = vmul.f32 0.044715, %v2203_v60 }
  0x5e   : > { %v582_v7 = vadd.f32 %v550_v61, %v2179_v46  ;;  %v583_v9 = vadd.f32 %v551_v0, %v2182_v51  ;;  %v407_v11 = vmul.f32 %v1917_v8, %v336_v12  ;;  %v467_v23 = vmul.f32 0.5, %v2143_v45 }
  0x5f   : > { %v740_v13 = vpack.c.bf16 %v721_v3, %v720_v28  ;;  %v532_v14 = vmul.f32 %v500_v32, %v2198_v52  ;;  %v2218_v15 = vadd.f32 %v406_v62, %v367_v1  ;;  %v533_v17 = vmul.f32 %v501_v10, %v2203_v60 }
  0x60   : > { %v1713_v5 = vpop.eup %1712  ;;  %v614_v30 = vmul.f32 0.7978846, %v582_v7  ;;  %v615_v16 = vmul.f32 0.7978846, %v583_v9  ;;  %v439_v18 = vadd.f32 %v407_v11, %v368_v26  ;;  %v452_v33 = vmul.f32 0.5, %v2162_v63 }
  0x61   : > { %v1715_v19 = vpop.eup %1714  ;;  %1628 = vmatprep.mubr.bf16.mxu1 %v740_v13  ;;  %v690_v24 = vadd.f32 1.0, %v1713_v5  ;;  %v564_v25 = vmul.f32 %v532_v14, %v2198_v52  ;;  %v502_v8 = vmul.f32 0.044715, %v2218_v15  ;;  %v565_v45 = vmul.f32 %v533_v17, %v2203_v60 }
  0x62   : > { %v691_v37 = vadd.f32 1.0, %v1715_v19  ;;  %1720 = vtanh.f32 %v614_v30  ;;  %v503_v41 = vmul.f32 0.044715, %v439_v18  ;;  %v453_v38 = vmul.f32 0.5, %v2166_v6 }
  0x63   : > { %v722_v27 = vmul.f32 %v690_v24, %v466_v4  ;;  %1722 = vtanh.f32 %v615_v16  ;;  %v596_v29 = vadd.f32 %v564_v25, %v2198_v52  ;;  %v597_v34 = vadd.f32 %v565_v45, %v2203_v60 }
  0x64   : > { %v723_v31 = vmul.f32 %v691_v37, %v467_v23  ;;  %v534_v35 = vmul.f32 %v502_v8, %v2218_v15  ;;  %v535_v39 = vmul.f32 %v503_v41, %v439_v18  ;;  %v454_v62 = vmul.f32 0.5, %v2179_v46 }
  0x65   : > { %v1717_v36 = vpop.eup %1716  ;;  %v628_v21 = vmul.f32 0.7978846, %v596_v29  ;;  %v629_v44 = vmul.f32 0.7978846, %v597_v34  ;;  %v455_v55 = vmul.f32 0.5, %v2182_v51  ;;  %v468_v28 = vmul.f32 0.5, %v2198_v52 }
  0x66   : > { %v1719_v42 = vpop.eup %1718  ;;  %v741_v22 = vpack.c.bf16 %v723_v31, %v722_v27  ;;  %v676_v43 = vadd.f32 1.0, %v1717_v36  ;;  %v566_v47 = vmul.f32 %v534_v35, %v2218_v15  ;;  %v567_v57 = vmul.f32 %v535_v39, %v439_v18 }
  0x67   : > { %v677_v48 = vadd.f32 1.0, %v1719_v42  ;;  %1724 = vtanh.f32 %v628_v21  ;;  %v469_v0 = vmul.f32 0.5, %v2203_v60  ;;  %v470_v26 = vmul.f32 0.5, %v2218_v15  ;;  %v2239_v60 = vld [vmem:[%s2712_s4] ss:$0 sm:$0xff] }
  0x68   : > { %1629 = vmatmul.mubr.bf16.gmra.mrb[8].mxu1 %v741_v22  ;;  %v708_v63 = vmul.f32 %v676_v43, %v452_v33  ;;  %1726 = vtanh.f32 %v629_v44  ;;  %v598_v2 = vadd.f32 %v566_v47, %v2218_v15  ;;  %v599_v49 = vadd.f32 %v567_v57, %v439_v18 }
  0x69   : > { %v709_v58 = vmul.f32 %v677_v48, %v453_v38  ;;  %v471_v9 = vmul.f32 0.5, %v439_v18 }
  0x6a   : > { %v630_v50 = vmul.f32 0.7978846, %v598_v2  ;;  %v631_v53 = vmul.f32 0.7978846, %v599_v49 }
  0x6b   : > { %v734_v6 = vpack.c.bf16 %v709_v58, %v708_v63 }
  0x6c   : > { %v1721_v54 = vpop.eup %1720  ;;  %1728 = vtanh.f32 %v630_v50 }
  0x6d   : > { %v1723_v20 = vpop.eup %1722  ;;  %1616 = vmatprep.mubr.bf16.mxu0 %v734_v6  ;;  %v678_v40 = vadd.f32 1.0, %v1721_v54  ;;  %1730 = vtanh.f32 %v631_v53 }
  0x6e   : > { %v679_v56 = vadd.f32 1.0, %v1723_v20 }
  0x6f   : > { %v710_v59 = vmul.f32 %v678_v40, %v454_v62 }
  0x70   : > { %v711_v12 = vmul.f32 %v679_v56, %v455_v55 }
  0x71   : > { %v1725_v61 = vpop.eup %1724 }
  0x72   : > { %v1727_v1 = vpop.eup %1726  ;;  %v735_v3 = vpack.c.bf16 %v711_v12, %v710_v59  ;;  %v692_v46 = vadd.f32 1.0, %v1725_v61 }
  0x73   : > { %v693_v4 = vadd.f32 1.0, %v1727_v1 }
  0x74   : > { %1617 = vmatmul.mubr.bf16.gmra.mrb[12].mxu0 %v735_v3  ;;  %v724_v32 = vmul.f32 %v692_v46, %v468_v28 }
  0x75   : > { %v725_v51 = vmul.f32 %v693_v4, %v469_v0 }
  0x76   : > { %v1729_v7 = vpop.eup %1728 }
  0x77   : > { %v1731_v10 = vpop.eup %1730  ;;  %v742_v11 = vpack.c.bf16 %v725_v51, %v724_v32  ;;  %v694_v13 = vadd.f32 1.0, %v1729_v7 }
  0x78   : > { %v695_v23 = vadd.f32 1.0, %v1731_v10 }
  0x79   : > { %1632 = vmatprep.mubr.bf16.mxu1 %v742_v11  ;;  %v726_v52 = vmul.f32 %v694_v13, %v470_v26 }
  0x7a   : > { %v727_v14 = vmul.f32 %v695_v23, %v471_v9 }
  0x7c   : > { %v743_v5 = vpack.c.bf16 %v727_v14, %v726_v52 }
  0x7e   : > { %1633 = vmatmul.mubr.bf16.gmra.mrb[12].mxu1 %v743_v5 }
 0x108   : > { %v1606_v30 = vpop.f32.mrb[0].mxu0 }
 0x109   : > { %v2242_v16 = vadd.f32 %v1606_v30, %v2239_v60  ;;  %v849_v15 = vpop.f32.mrb[1].mxu0 }
 0x10a   : > { %v1607_v17 = vpop.f32.mrb[2].mxu0  ;;  %v2257_v29 = vadd.f32 %v2239_v60, %v849_v15 }
 0x10b   : > { %980 = vadd.xlane.f32.xlu1 %v2242_v16  ;;  %v852_v18 = vpop.f32.mrb[3].mxu0  ;;  %v2246_v19 = vadd.f32 %v1607_v17, %v2239_v60 }
 0x10c   : > { %v1622_v24 = vpop.f32.mrb[0].mxu1  ;;  %v2270_v36 = vadd.f32 %v2239_v60, %v852_v18 }
 0x10d   : > { %v2249_v25 = vadd.f32 %v1622_v24, %v2239_v60  ;;  %v913_v8 = vpop.f32.mrb[1].mxu1 }
 0x10e   : > { %v1623_v37 = vpop.f32.mrb[2].mxu1  ;;  %v2265_v31 = vadd.f32 %v2239_v60, %v913_v8 }
 0x10f   : > { %982 = vadd.xlane.f32.xlu1 %v2246_v19  ;;  %v2253_v45 = vadd.f32 %v1623_v37, %v2239_v60  ;;  %1012 = vadd.xlane.f32.xlu0 %v2249_v25  ;;  %v916_v27 = vpop.f32.mrb[3].mxu1 }
 0x110   : > { %v2261_v41 = vadd.f32 %v2239_v60, %v916_v27 }
 0x113   : > { %1014 = vadd.xlane.f32.xlu1 %v2253_v45  ;;  %976 = vadd.xlane.f32.xlu0 %v2257_v29 }
 0x116   : > { %v1610_v33 = vpop.f32.mrb[4].mxu0 }
 0x117   : > { %1010 = vadd.xlane.f32.xlu1 %v2261_v41  ;;  %1008 = vadd.xlane.f32.xlu0 %v2265_v31  ;;  %v865_v34 = vpop.f32.mrb[5].mxu0  ;;  %v2276_v39 = vadd.f32 %v1610_v33, %v2239_v60 }
 0x118   : > { %v1611_v35 = vpop.f32.mrb[6].mxu0  ;;  %v2289_v57 = vadd.f32 %v2239_v60, %v865_v34 }
 0x119   : > { %v2273_v38 = vadd.f32 %v1611_v35, %v2239_v60  ;;  %v868_v21 = vpop.f32.mrb[7].mxu0 }
 0x11a   : > { %v2293_v63 = vadd.f32 %v2239_v60, %v868_v21 }
 0x11b   : > { %978 = vadd.xlane.f32.xlu0 %v2270_v36  ;;  %990 = vadd.xlane.f32.xlu1 %v2273_v38 }
 0x11f   : > { %988 = vadd.xlane.f32.xlu0 %v2276_v39 }
 0x123   : > { %v1626_v42 = vpop.f32.mrb[4].mxu1 }
 0x124   : > { %v2282_v22 = vadd.f32 %v1626_v42, %v2239_v60  ;;  %v929_v43 = vpop.f32.mrb[5].mxu1 }
 0x125   : > { %v1627_v44 = vpop.f32.mrb[6].mxu1  ;;  %v2297_v2 = vadd.f32 %v2239_v60, %v929_v43 }
 0x126   : > { %v2285_v47 = vadd.f32 %v1627_v44, %v2239_v60  ;;  %v932_v48 = vpop.f32.mrb[7].mxu1  ;;  %1020 = vadd.xlane.f32.xlu0 %v2282_v22 }
 0x127   : > { %v2301_v58 = vadd.f32 %v2239_v60, %v932_v48 }
 0x128   : > { %1022 = vadd.xlane.f32.xlu1 %v2285_v47 }
 0x12a   : > { %984 = vadd.xlane.f32.xlu0 %v2289_v57 }
 0x12c   : > { %986 = vadd.xlane.f32.xlu1 %v2293_v63 }
 0x12e   : > { %1016 = vadd.xlane.f32.xlu0 %v2297_v2 }
 0x130   : > { %v1614_v49 = vpop.f32.mrb[8].mxu0  ;;  %1018 = vadd.xlane.f32.xlu1 %v2301_v58 }
 0x131   : > { %v2306_v50 = vadd.f32 %v1614_v49, %v2239_v60  ;;  %v881_v6 = vpop.f32.mrb[9].mxu0 }
 0x132   : > { %v1615_v62 = vpop.f32.mrb[10].mxu0  ;;  %v2321_v28 = vadd.f32 %v2239_v60, %v881_v6 }
 0x133   : > { %v2309_v53 = vadd.f32 %v1615_v62, %v2239_v60  ;;  %v884_v54 = vpop.f32.mrb[11].mxu0  ;;  %996 = vadd.xlane.f32.xlu0 %v2306_v50 }
 0x134   : > { %v2325_v61 = vadd.f32 %v2239_v60, %v884_v54 }
 0x135   : > { %998 = vadd.xlane.f32.xlu1 %v2309_v53 }
 0x13b   : > { %v1630_v55 = vpop.f32.mrb[8].mxu1 }
 0x13c   : > { %v2314_v20 = vadd.f32 %v1630_v55, %v2239_v60  ;;  %v945_v40 = vpop.f32.mrb[9].mxu1 }
 0x13d   : > { %v1631_v56 = vpop.f32.mrb[10].mxu1  ;;  %v2329_v0 = vadd.f32 %v2239_v60, %v945_v40 }
 0x13e   : > { %v2317_v59 = vadd.f32 %v1631_v56, %v2239_v60  ;;  %v948_v12 = vpop.f32.mrb[11].mxu1  ;;  %1028 = vadd.xlane.f32.xlu0 %v2314_v20 }
 0x13f   : > { %v2333_v1 = vadd.f32 %v2239_v60, %v948_v12 }
 0x140   : > { %1030 = vadd.xlane.f32.xlu1 %v2317_v59 }
 0x142   : > { %992 = vadd.xlane.f32.xlu0 %v2321_v28 }
 0x144   : > { %994 = vadd.xlane.f32.xlu1 %v2325_v61 }
 0x146   : > { %1024 = vadd.xlane.f32.xlu0 %v2329_v0 }
 0x147   : > { %v1618_v3 = vpop.f32.mrb[12].mxu0 }
 0x148   : > { %v2337_v46 = vadd.f32 %v1618_v3, %v2239_v60  ;;  %v897_v4 = vpop.f32.mrb[13].mxu0  ;;  %1026 = vadd.xlane.f32.xlu1 %v2333_v1 }
 0x149   : > { %v1619_v32 = vpop.f32.mrb[14].mxu0  ;;  %v2345_v7 = vadd.f32 %v2239_v60, %v897_v4 }
 0x14a   : > { %v2341_v51 = vadd.f32 %v1619_v32, %v2239_v60  ;;  %v900_v26 = vpop.f32.mrb[15].mxu0  ;;  %1004 = vadd.xlane.f32.xlu0 %v2337_v46 }
 0x14b   : > { %v2349_v9 = vadd.f32 %v2239_v60, %v900_v26 }
 0x14c   : > { %1006 = vadd.xlane.f32.xlu1 %v2341_v51 }
 0x14e   : > { %1000 = vadd.xlane.f32.xlu0 %v2345_v7 }
 0x150   : > { %1002 = vadd.xlane.f32.xlu1 %v2349_v9 }
 0x151   : > { %v1634_v10 = vpop.f32.mrb[12].mxu1 }
 0x152   : > { %v961_v11 = vpop.f32.mrb[13].mxu1  ;;  %v2361_v5 = vadd.f32 %v1634_v10, %v2239_v60 }
 0x153   : > { %v2354_v13 = vadd.f32 %v2239_v60, %v961_v11  ;;  %v1635_v23 = vpop.f32.mrb[14].mxu1 }
 0x154   : > { %v964_v52 = vpop.f32.mrb[15].mxu1  ;;  %v2365_v30 = vadd.f32 %v1635_v23, %v2239_v60 }
 0x155   : > { %v2357_v14 = vadd.f32 %v2239_v60, %v964_v52  ;;  %1032 = vadd.xlane.f32.xlu0 %v2354_v13 }
 0x157   : > { %1034 = vadd.xlane.f32.xlu1 %v2357_v14 }
 0x159   : > { %1036 = vadd.xlane.f32.xlu0 %v2361_v5 }
 0x15b   : > { %1038 = vadd.xlane.f32.xlu1 %v2365_v30 }
 0x198   : > { %v981_v15 = vpop.xlane.xlu1 %980 }
 0x199   : > { %v1043_v17 = vmul.f32 0.0078125, %v981_v15 }
 0x19b   : > { %v2370_v18 = vsub.f32 %v2242_v16, %v1043_v17 }
 0x19c   : > { %v983_v24 = vpop.xlane.xlu1 %982  ;;  %v1013_v27 = vpop.xlane.xlu0 %1012 }
 0x19d   : > { %v1044_v8 = vmul.f32 0.0078125, %v983_v24  ;;  %v1107_v37 = vmul.f32 %v2370_v18, %v2370_v18  ;;  %v1059_v33 = vmul.f32 0.0078125, %v1013_v27 }
 0x19f   : > { %v2375_v34 = vsub.f32 %v2246_v19, %v1044_v8  ;;  %1141 = vadd.xlane.f32.xlu0 %v1107_v37  ;;  %v2378_v35 = vsub.f32 %v2249_v25, %v1059_v33 }
 0x1a0   : > { %v1015_v60 = vpop.xlane.xlu1 %1014  ;;  %v977_v42 = vpop.xlane.xlu0 %976 }
 0x1a1   : > { %v1060_v21 = vmul.f32 0.0078125, %v1015_v60  ;;  %v1108_v16 = vmul.f32 %v2375_v34, %v2375_v34  ;;  %v1041_v43 = vmul.f32 0.0078125, %v977_v42  ;;  %v1123_v48 = vmul.f32 %v2378_v35, %v2378_v35 }
 0x1a3   : > { %v2383_v44 = vsub.f32 %v2253_v45, %v1060_v21  ;;  %1143 = vadd.xlane.f32.xlu1 %v1108_v16  ;;  %v2388_v19 = vsub.f32 %v2257_v29, %v1041_v43  ;;  %1173 = vadd.xlane.f32.xlu0 %v1123_v48 }
 0x1a4   : > { %v1009_v49 = vpop.xlane.xlu0 %1008  ;;  %v1011_v6 = vpop.xlane.xlu1 %1010 }
 0x1a5   : > { %v1124_v25 = vmul.f32 %v2383_v44, %v2383_v44  ;;  %v1057_v62 = vmul.f32 0.0078125, %v1009_v49  ;;  %v1105_v54 = vmul.f32 %v2388_v19, %v2388_v19  ;;  %v1058_v40 = vmul.f32 0.0078125, %v1011_v6 }
 0x1a7   : > { %1175 = vadd.xlane.f32.xlu1 %v1124_v25  ;;  %v2395_v45 = vsub.f32 %v2265_v31, %v1057_v62  ;;  %1137 = vadd.xlane.f32.xlu0 %v1105_v54  ;;  %v2403_v32 = vsub.f32 %v2261_v41, %v1058_v40 }
 0x1a8   : > { %v979_v55 = vpop.xlane.xlu0 %978  ;;  %v991_v12 = vpop.xlane.xlu1 %990 }
 0x1a9   : > { %v1042_v56 = vmul.f32 0.0078125, %v979_v55  ;;  %v1121_v29 = vmul.f32 %v2395_v45, %v2395_v45  ;;  %v1048_v26 = vmul.f32 0.0078125, %v991_v12 }
 0x1ab   : > { %v2400_v3 = vsub.f32 %v2270_v36, %v1042_v56  ;;  %1169 = vadd.xlane.f32.xlu0 %v1121_v29  ;;  %v2411_v23 = vsub.f32 %v2273_v38, %v1048_v26  ;;  %v1122_v36 = vmul.f32 %v2403_v32, %v2403_v32 }
 0x1ac   : > { %v989_v4 = vpop.xlane.xlu0 %988 }
 0x1ad   : > { %v1047_v10 = vmul.f32 0.0078125, %v989_v4  ;;  %v1106_v31 = vmul.f32 %v2400_v3, %v2400_v3  ;;  %v1112_v24 = vmul.f32 %v2411_v23, %v2411_v23 }
 0x1af   : > { %v2408_v11 = vsub.f32 %v2276_v39, %v1047_v10  ;;  %1139 = vadd.xlane.f32.xlu1 %v1106_v31 }
 0x1b1   : > { %v1111_v52 = vmul.f32 %v2408_v11, %v2408_v11 }
 0x1b3   : > { %v1021_v41 = vpop.xlane.xlu0 %1020  ;;  %1171 = vadd.xlane.f32.xlu1 %v1122_v36  ;;  %1149 = vadd.xlane.f32.xlu0 %v1111_v52 }
 0x1b4   : > { %v1063_v15 = vmul.f32 0.0078125, %v1021_v41 }
 0x1b5   : > { %v1023_v17 = vpop.xlane.xlu1 %1022 }
 0x1b6   : > { %v1064_v39 = vmul.f32 0.0078125, %v1023_v17  ;;  %v2420_v8 = vsub.f32 %v2282_v22, %v1063_v15 }
 0x1b7   : > { %v985_v38 = vpop.xlane.xlu0 %984  ;;  %1151 = vadd.xlane.f32.xlu1 %v1112_v24 }
 0x1b8   : > { %v2423_v37 = vsub.f32 %v2285_v47, %v1064_v39  ;;  %v1045_v27 = vmul.f32 0.0078125, %v985_v38  ;;  %v1127_v33 = vmul.f32 %v2420_v8, %v2420_v8 }
 0x1b9   : > { %v987_v60 = vpop.xlane.xlu1 %986 }
 0x1ba   : > { %v1046_v21 = vmul.f32 0.0078125, %v987_v60  ;;  %v2428_v16 = vsub.f32 %v2289_v57, %v1045_v27  ;;  %1181 = vadd.xlane.f32.xlu0 %v1127_v33  ;;  %v1128_v42 = vmul.f32 %v2423_v37, %v2423_v37 }
 0x1bb   : > { %v1017_v22 = vpop.xlane.xlu0 %1016 }
 0x1bc   : > { %v2433_v43 = vsub.f32 %v2293_v63, %v1046_v21  ;;  %v1061_v48 = vmul.f32 0.0078125, %v1017_v22  ;;  %1183 = vadd.xlane.f32.xlu1 %v1128_v42  ;;  %v1109_v47 = vmul.f32 %v2428_v16, %v2428_v16 }
 0x1bd   : > { %v1019_v25 = vpop.xlane.xlu1 %1018 }
 0x1be   : > { %v1062_v49 = vmul.f32 0.0078125, %v1019_v25  ;;  %v2438_v6 = vsub.f32 %v2297_v2, %v1061_v48  ;;  %1145 = vadd.xlane.f32.xlu0 %v1109_v47  ;;  %v1110_v57 = vmul.f32 %v2433_v43, %v2433_v43 }
 0x1c0   : > { %v2443_v62 = vsub.f32 %v2301_v58, %v1062_v49  ;;  %v997_v54 = vpop.xlane.xlu0 %996  ;;  %1147 = vadd.xlane.f32.xlu1 %v1110_v57  ;;  %v1125_v63 = vmul.f32 %v2438_v6, %v2438_v6 }
 0x1c1   : > { %v1051_v55 = vmul.f32 0.0078125, %v997_v54 }
 0x1c2   : > { %v999_v40 = vpop.xlane.xlu1 %998  ;;  %1177 = vadd.xlane.f32.xlu0 %v1125_v63  ;;  %v1126_v56 = vmul.f32 %v2443_v62, %v2443_v62 }
 0x1c3   : > { %v1052_v2 = vmul.f32 0.0078125, %v999_v40  ;;  %v2450_v29 = vsub.f32 %v2306_v50, %v1051_v55 }
 0x1c4   : > { %1179 = vadd.xlane.f32.xlu1 %v1126_v56 }
 0x1c5   : > { %v2453_v12 = vsub.f32 %v2309_v53, %v1052_v2  ;;  %v1115_v58 = vmul.f32 %v2450_v29, %v2450_v29 }
 0x1c7   : > { %1157 = vadd.xlane.f32.xlu0 %v1115_v58  ;;  %v1116_v4 = vmul.f32 %v2453_v12, %v2453_v12 }
 0x1c9   : > { %1159 = vadd.xlane.f32.xlu1 %v1116_v4 }
 0x1cb   : > { %v1029_v26 = vpop.xlane.xlu0 %1028 }
 0x1cc   : > { %v1067_v10 = vmul.f32 0.0078125, %v1029_v26 }
 0x1cd   : > { %v1031_v31 = vpop.xlane.xlu1 %1030 }
 0x1ce   : > { %v1068_v36 = vmul.f32 0.0078125, %v1031_v31  ;;  %v2460_v52 = vsub.f32 %v2314_v20, %v1067_v10 }
 0x1cf   : > { %v993_v50 = vpop.xlane.xlu0 %992 }
 0x1d0   : > { %v2463_v41 = vsub.f32 %v2317_v59, %v1068_v36  ;;  %v1049_v53 = vmul.f32 0.0078125, %v993_v50  ;;  %v1131_v15 = vmul.f32 %v2460_v52, %v2460_v52 }
 0x1d1   : > { %v995_v17 = vpop.xlane.xlu1 %994 }
 0x1d2   : > { %v1050_v24 = vmul.f32 0.0078125, %v995_v17  ;;  %v2468_v39 = vsub.f32 %v2321_v28, %v1049_v53  ;;  %1189 = vadd.xlane.f32.xlu0 %v1131_v15  ;;  %v1132_v38 = vmul.f32 %v2463_v41, %v2463_v41 }
 0x1d3   : > { %v1025_v27 = vpop.xlane.xlu0 %1024 }
 0x1d4   : > { %v2473_v20 = vsub.f32 %v2325_v61, %v1050_v24  ;;  %v1065_v33 = vmul.f32 0.0078125, %v1025_v27  ;;  %1191 = vadd.xlane.f32.xlu1 %v1132_v38  ;;  %v1113_v59 = vmul.f32 %v2468_v39, %v2468_v39 }
 0x1d5   : > { %v1027_v60 = vpop.xlane.xlu1 %1026 }
 0x1d6   : > { %v1066_v21 = vmul.f32 0.0078125, %v1027_v60  ;;  %v2478_v42 = vsub.f32 %v2329_v0, %v1065_v33  ;;  %1153 = vadd.xlane.f32.xlu0 %v1113_v59  ;;  %v1114_v28 = vmul.f32 %v2473_v20, %v2473_v20 }
 0x1d7   : > { %v1005_v22 = vpop.xlane.xlu0 %1004 }
 0x1d8   : > { %v2483_v48 = vsub.f32 %v2333_v1, %v1066_v21  ;;  %v1055_v61 = vmul.f32 0.0078125, %v1005_v22  ;;  %1155 = vadd.xlane.f32.xlu1 %v1114_v28  ;;  %v1129_v47 = vmul.f32 %v2478_v42, %v2478_v42 }
 0x1d9   : > { %v1007_v25 = vpop.xlane.xlu1 %1006 }
 0x1da   : > { %v1056_v49 = vmul.f32 0.0078125, %v1007_v25  ;;  %v2488_v57 = vsub.f32 %v2337_v46, %v1055_v61  ;;  %1185 = vadd.xlane.f32.xlu0 %v1129_v47  ;;  %v1130_v0 = vmul.f32 %v2483_v48, %v2483_v48 }
 0x1db   : > { %v1001_v54 = vpop.xlane.xlu0 %1000 }
 0x1dc   : > { %v2493_v63 = vsub.f32 %v2341_v51, %v1056_v49  ;;  %v1053_v1 = vmul.f32 0.0078125, %v1001_v54  ;;  %1187 = vadd.xlane.f32.xlu1 %v1130_v0  ;;  %v1119_v55 = vmul.f32 %v2488_v57, %v2488_v57 }
 0x1dd   : > { %v1003_v40 = vpop.xlane.xlu1 %1002 }
 0x1de   : > { %v1054_v56 = vmul.f32 0.0078125, %v1003_v40  ;;  %v2498_v2 = vsub.f32 %v2345_v7, %v1053_v1  ;;  %1165 = vadd.xlane.f32.xlu0 %v1119_v55  ;;  %v1120_v46 = vmul.f32 %v2493_v63, %v2493_v63 }
 0x1e0   : > { %v2503_v58 = vsub.f32 %v2349_v9, %v1054_v56  ;;  %1167 = vadd.xlane.f32.xlu1 %v1120_v46  ;;  %v1117_v51 = vmul.f32 %v2498_v2, %v2498_v2  ;;  %v2532_v46 = vld [vmem:[%s2713_s5] ss:$0 sm:$0xff] }
 0x1e2   : > { %v1033_v4 = vpop.xlane.xlu0 %1032  ;;  %1161 = vadd.xlane.f32.xlu0 %v1117_v51  ;;  %v1118_v26 = vmul.f32 %v2503_v58, %v2503_v58 }
 0x1e3   : > { %v1069_v10 = vmul.f32 0.0078125, %v1033_v4 }
 0x1e4   : > { %v1035_v31 = vpop.xlane.xlu1 %1034  ;;  %1163 = vadd.xlane.f32.xlu1 %v1118_v26  ;;  %v2538_v26 = vld [vmem:[%s2714_s6] ss:$0 sm:$0xff] }
 0x1e5   : > { %v1070_v7 = vmul.f32 0.0078125, %v1035_v31  ;;  %v2510_v36 = vsub.f32 %v2354_v13, %v1069_v10 }
 0x1e6   : > { %v1037_v50 = vpop.xlane.xlu0 %1036 }
 0x1e7   : > { %v2513_v9 = vsub.f32 %v2357_v14, %v1070_v7  ;;  %v1071_v53 = vmul.f32 0.0078125, %v1037_v50  ;;  %v1133_v15 = vmul.f32 %v2510_v36, %v2510_v36 }
 0x1e8   : > { %v1039_v17 = vpop.xlane.xlu1 %1038 }
 0x1e9   : > { %v1072_v24 = vmul.f32 0.0078125, %v1039_v17  ;;  %v2518_v38 = vsub.f32 %v2361_v5, %v1071_v53  ;;  %1193 = vadd.xlane.f32.xlu0 %v1133_v15  ;;  %v1134_v27 = vmul.f32 %v2513_v9, %v2513_v9 }
 0x1eb   : > { %v2523_v13 = vsub.f32 %v2365_v30, %v1072_v24  ;;  %1195 = vadd.xlane.f32.xlu1 %v1134_v27  ;;  %v1135_v14 = vmul.f32 %v2518_v38, %v2518_v38  ;;  %v1796_v27 = vld [vmem:[%s1905_s16 + $0x10] sm:$0xff] }
 0x1ed   : > { %1197 = vadd.xlane.f32.xlu0 %v1135_v14  ;;  %v1136_v33 = vmul.f32 %v2523_v13, %v2523_v13 }
 0x1ef   : > { %1199 = vadd.xlane.f32.xlu1 %v1136_v33 }
 0x22c   : > { %v1142_v59 = vpop.xlane.xlu0 %1141 }
 0x22d   : > { %v1203_v60 = vmul.f32 0.0078125, %v1142_v59 }
 0x22f   : > { %v1235_v5 = vadd.f32 1e-05, %v1203_v60 }
 0x230   : > { %v1144_v21 = vpop.xlane.xlu1 %1143  ;;  %v1174_v22 = vpop.xlane.xlu0 %1173 }
 0x231   : > { %1732 = vrsqrt.f32 %v1235_v5  ;;  %v1204_v28 = vmul.f32 0.0078125, %v1144_v21  ;;  %v1219_v47 = vmul.f32 0.0078125, %v1174_v22 }
 0x233   : > { %v1236_v61 = vadd.f32 1e-05, %v1204_v28  ;;  %v1251_v25 = vadd.f32 1e-05, %v1219_v47 }
 0x234   : > { %v1176_v30 = vpop.xlane.xlu1 %1175  ;;  %v1138_v0 = vpop.xlane.xlu0 %1137 }
 0x235   : > { %1734 = vrsqrt.f32 %v1236_v61  ;;  %v1220_v49 = vmul.f32 0.0078125, %v1176_v30  ;;  %v1201_v1 = vmul.f32 0.0078125, %v1138_v0  ;;  %v1797_v0 = vld [vmem:[%s1905_s16 + $0x18] sm:$0xff] }
 0x236   : > { %1736 = vrsqrt.f32 %v1251_v25 }
 0x237   : > { %v1252_v54 = vadd.f32 1e-05, %v1220_v49  ;;  %v1233_v55 = vadd.f32 1e-05, %v1201_v1 }
 0x238   : > { %v1170_v40 = vpop.xlane.xlu0 %1169 }
 0x239   : > { %1738 = vrsqrt.f32 %v1252_v54  ;;  %v1217_v51 = vmul.f32 0.0078125, %v1170_v40 }
 0x23a   : > { %1740 = vrsqrt.f32 %v1233_v55 }
 0x23b   : > { %v1733_v56 = vpop.eup %1732  ;;  %v1249_v10 = vadd.f32 1e-05, %v1217_v51  ;;  %v1798_v51 = vld [vmem:[%s1905_s16 + $0x90] sm:$0xff] }
 0x23c   : > { %v1299_v4 = vmul.f32 %v1733_v56, %v2370_v18  ;;  %v1140_v7 = vpop.xlane.xlu1 %1139 }
 0x23d   : > { %v1202_v53 = vmul.f32 0.0078125, %v1140_v7  ;;  %1742 = vrsqrt.f32 %v1249_v10 }
 0x23e   : > { %v1338_v31 = vmul.f32 %v2532_v46, %v1299_v4 }
 0x23f   : > { %v1735_v50 = vpop.eup %1734  ;;  %v1234_v18 = vadd.f32 1e-05, %v1202_v53  ;;  %v1799_v53 = vld [vmem:[%s1905_s16 + $0x98] sm:$0xff] }
 0x240   : > { %v1377_v15 = vadd.f32 %v2538_v26, %v1338_v31  ;;  %v1300_v17 = vmul.f32 %v1735_v50, %v2375_v34  ;;  %v1737_v24 = vpop.eup %1736  ;;  %v1172_v60 = vpop.xlane.xlu1 %1171 }
 0x241   : > { %v1315_v59 = vmul.f32 %v1737_v24, %v2378_v35  ;;  %v1150_v5 = vpop.xlane.xlu0 %1149  ;;  %1744 = vrsqrt.f32 %v1234_v18  ;;  %v1218_v34 = vmul.f32 0.0078125, %v1172_v60 }
 0x242   : > { %v1409_v14 = vadd.f32 %v1796_v27, %v1377_v15  ;;  %v1339_v33 = vmul.f32 %v2532_v46, %v1300_v17  ;;  %v1207_v28 = vmul.f32 0.0078125, %v1150_v5  ;;  %v1800_v27 = vld [vmem:[%s1905_s16] sm:$0xff] }
 0x243   : > { %v1739_v21 = vpop.eup %1738  ;;  %v1354_v61 = vmul.f32 %v2532_v46, %v1315_v59  ;;  %v1250_v25 = vadd.f32 1e-05, %v1218_v34 }
 0x244   : > { %1441 = vst [vmem:[%s2547_s17 + $0x10] sm:$0xff] %v1409_v14  ;;  %v1378_v22 = vadd.f32 %v2538_v26, %v1339_v33  ;;  %v1316_v47 = vmul.f32 %v1739_v21, %v2383_v44  ;;  %v1741_v30 = vpop.eup %1740  ;;  %v1239_v49 = vadd.f32 1e-05, %v1207_v28  ;;  %v1152_v40 = vpop.xlane.xlu1 %1151 }
 0x245   : > { %v1393_v54 = vadd.f32 %v2538_v26, %v1354_v61  ;;  %v1297_v55 = vmul.f32 %v1741_v30, %v2388_v19  ;;  %1746 = vrsqrt.f32 %v1250_v25  ;;  %v1208_v56 = vmul.f32 0.0078125, %v1152_v40  ;;  %v1801_v30 = vld [vmem:[%s1905_s16 + $0x80] sm:$0xff] }
 0x246   : > { %v1410_v35 = vadd.f32 %v1797_v0, %v1378_v22  ;;  %v1355_v1 = vmul.f32 %v2532_v46, %v1316_v47  ;;  %1748 = vrsqrt.f32 %v1239_v49 }
 0x247   : > { %v1425_v44 = vadd.f32 %v1798_v51, %v1393_v54  ;;  %v1336_v10 = vmul.f32 %v2532_v46, %v1297_v55  ;;  %v1743_v31 = vpop.eup %1742  ;;  %v1240_v7 = vadd.f32 1e-05, %v1208_v56  ;;  %v1182_v50 = vpop.xlane.xlu0 %1181 }
 0x248   : > { %1442 = vst [vmem:[%s2547_s17 + $0x18] sm:$0xff] %v1410_v35  ;;  %v1394_v4 = vadd.f32 %v2538_v26, %v1355_v1  ;;  %v1313_v17 = vmul.f32 %v1743_v31, %v2395_v45  ;;  %v1223_v24 = vmul.f32 0.0078125, %v1182_v50 }
 0x249   : > { %1457 = vst [vmem:[%s2547_s17 + $0x90] sm:$0xff] %v1425_v44  ;;  %v1375_v15 = vadd.f32 %v2538_v26, %v1336_v10  ;;  %1750 = vrsqrt.f32 %v1240_v7  ;;  %v1184_v18 = vpop.xlane.xlu1 %1183 }
 0x24a   : > { %v1426_v19 = vadd.f32 %v1799_v53, %v1394_v4  ;;  %v1352_v33 = vmul.f32 %v2532_v46, %v1313_v17  ;;  %v1255_v59 = vadd.f32 1e-05, %v1223_v24  ;;  %v1224_v60 = vmul.f32 0.0078125, %v1184_v18  ;;  %v1802_v4 = vld [vmem:[%s1905_s16 + $0x8] sm:$0xff] }
 0x24b   : > { %v1407_v14 = vadd.f32 %v1800_v27, %v1375_v15  ;;  %v1745_v5 = vpop.eup %1744  ;;  %v1146_v21 = vpop.xlane.xlu0 %1145 }
 0x24c   : > { %1458 = vst [vmem:[%s2547_s17 + $0x98] sm:$0xff] %v1426_v19  ;;  %v1298_v34 = vmul.f32 %v1745_v5, %v2400_v3  ;;  %v1391_v28 = vadd.f32 %v2538_v26, %v1352_v33  ;;  %1752 = vrsqrt.f32 %v1255_v59  ;;  %v1256_v45 = vadd.f32 1e-05, %v1224_v60  ;;  %v1804_v5 = vld [vmem:[%s1905_s16 + $0x30] sm:$0xff] }
 0x24d   : > { %1439 = vst [vmem:[%s2547_s17] sm:$0xff] %v1407_v14  ;;  %v1205_v22 = vmul.f32 0.0078125, %v1146_v21  ;;  %v1148_v61 = vpop.xlane.xlu1 %1147  ;;  %v1803_v14 = vld [vmem:[%s1905_s16 + $0x88] sm:$0xff] }
 0x24e   : > { %v1337_v47 = vmul.f32 %v2532_v46, %v1298_v34  ;;  %v1423_v25 = vadd.f32 %v1801_v30, %v1391_v28  ;;  %1754 = vrsqrt.f32 %v1256_v45  ;;  %v1206_v49 = vmul.f32 0.0078125, %v1148_v61  ;;  %v1805_v30 = vld [vmem:[%s1905_s16 + $0x38] sm:$0xff] }
 0x24f   : > { %v1747_v0 = vpop.eup %1746  ;;  %v1237_v35 = vadd.f32 1e-05, %v1205_v22  ;;  %v1178_v54 = vpop.xlane.xlu0 %1177 }
 0x250   : > { %v1749_v1 = vpop.eup %1748  ;;  %v1376_v3 = vadd.f32 %v2538_v26, %v1337_v47  ;;  %1455 = vst [vmem:[%s2547_s17 + $0x80] sm:$0xff] %v1423_v25  ;;  %v1314_v55 = vmul.f32 %v1747_v0, %v2403_v32  ;;  %v1238_v40 = vadd.f32 1e-05, %v1206_v49  ;;  %v1221_v56 = vmul.f32 0.0078125, %v1178_v54 }
 0x251   : > { %v1303_v51 = vmul.f32 %v1749_v1, %v2408_v11  ;;  %1756 = vrsqrt.f32 %v1237_v35  ;;  %v1180_v44 = vpop.xlane.xlu1 %1179 }
 0x252   : > { %v1408_v10 = vadd.f32 %v1802_v4, %v1376_v3  ;;  %v1353_v31 = vmul.f32 %v2532_v46, %v1314_v55  ;;  %1758 = vrsqrt.f32 %v1238_v40  ;;  %v1253_v7 = vadd.f32 1e-05, %v1221_v56  ;;  %v1806_v3 = vld [vmem:[%s1905_s16 + $0xb0] sm:$0xff] }
 0x253   : > { %v1751_v50 = vpop.eup %1750  ;;  %v1342_v53 = vmul.f32 %v2532_v46, %v1303_v51  ;;  %v1222_v19 = vmul.f32 0.0078125, %v1180_v44  ;;  %v1807_v44 = vld [vmem:[%s1905_s16 + $0xb8] sm:$0xff] }
 0x254   : > { %1440 = vst [vmem:[%s2547_s17 + $0x8] sm:$0xff] %v1408_v10  ;;  %v1392_v32 = vadd.f32 %v2538_v26, %v1353_v31  ;;  %v1304_v15 = vmul.f32 %v1751_v50, %v2411_v23  ;;  %1760 = vrsqrt.f32 %v1253_v7  ;;  %v1158_v11 = vpop.xlane.xlu0 %1157 }
 0x255   : > { %v1381_v17 = vadd.f32 %v2538_v26, %v1342_v53  ;;  %v1254_v24 = vadd.f32 1e-05, %v1222_v19  ;;  %v1211_v18 = vmul.f32 0.0078125, %v1158_v11 }
 0x256   : > { %v1753_v27 = vpop.eup %1752  ;;  %v1424_v33 = vadd.f32 %v1803_v14, %v1392_v32  ;;  %v1343_v59 = vmul.f32 %v2532_v46, %v1304_v15  ;;  %v1160_v60 = vpop.xlane.xlu1 %1159  ;;  %v1808_v15 = vld [vmem:[%s1905_s16 + $0x20] sm:$0xff] }
 0x257   : > { %v1413_v21 = vadd.f32 %v1804_v5, %v1381_v17  ;;  %v1319_v34 = vmul.f32 %v1753_v27, %v2420_v8  ;;  %1762 = vrsqrt.f32 %v1254_v24  ;;  %v1243_v23 = vadd.f32 1e-05, %v1211_v18  ;;  %v1809_v27 = vld [vmem:[%s1905_s16 + $0x28] sm:$0xff] }
 0x258   : > { %v1755_v28 = vpop.eup %1754  ;;  %1456 = vst [vmem:[%s2547_s17 + $0x88] sm:$0xff] %v1424_v33  ;;  %v1382_v45 = vadd.f32 %v2538_v26, %v1343_v59  ;;  %v1212_v22 = vmul.f32 0.0078125, %v1160_v60 }
 0x259   : > { %1445 = vst [vmem:[%s2547_s17 + $0x30] sm:$0xff] %v1413_v21  ;;  %v1358_v61 = vmul.f32 %v2532_v46, %v1319_v34  ;;  %v1320_v47 = vmul.f32 %v1755_v28, %v2423_v37  ;;  %1764 = vrsqrt.f32 %v1243_v23  ;;  %v1810_v34 = vld [vmem:[%s1905_s16 + $0xa0] sm:$0xff] }
 0x25a   : > { %v1414_v25 = vadd.f32 %v1805_v30, %v1382_v45  ;;  %v1244_v8 = vadd.f32 1e-05, %v1212_v22 }
 0x25b   : > { %v1757_v49 = vpop.eup %1756  ;;  %v1397_v0 = vadd.f32 %v2538_v26, %v1358_v61  ;;  %v1359_v35 = vmul.f32 %v2532_v46, %v1320_v47 }
 0x25c   : > { %v1759_v54 = vpop.eup %1758  ;;  %1446 = vst [vmem:[%s2547_s17 + $0x38] sm:$0xff] %v1414_v25  ;;  %v1301_v1 = vmul.f32 %v1757_v49, %v2428_v16  ;;  %1766 = vrsqrt.f32 %v1244_v8  ;;  %v1811_v8 = vld [vmem:[%s1905_s16 + $0xa8] sm:$0xff] }
 0x25d   : > { %v1429_v55 = vadd.f32 %v1806_v3, %v1397_v0  ;;  %v1398_v37 = vadd.f32 %v2538_v26, %v1359_v35  ;;  %v1302_v40 = vmul.f32 %v1759_v54, %v2433_v43 }
 0x25e   : > { %v1761_v56 = vpop.eup %1760  ;;  %v1340_v51 = vmul.f32 %v2532_v46, %v1301_v1 }
 0x25f   : > { %1461 = vst [vmem:[%s2547_s17 + $0xb0] sm:$0xff] %v1429_v55  ;;  %v1430_v4 = vadd.f32 %v1807_v44, %v1398_v37  ;;  %v1341_v10 = vmul.f32 %v2532_v46, %v1302_v40  ;;  %v1317_v16 = vmul.f32 %v1761_v56, %v2438_v6  ;;  %v1190_v31 = vpop.xlane.xlu0 %1189  ;;  %v1812_v55 = vld [vmem:[%s1905_s16 + $0x50] sm:$0xff] }
 0x260   : > { %v1379_v7 = vadd.f32 %v2538_v26, %v1340_v51  ;;  %v1227_v50 = vmul.f32 0.0078125, %v1190_v31 }
 0x261   : > { %v1763_v53 = vpop.eup %1762  ;;  %1462 = vst [vmem:[%s2547_s17 + $0xb8] sm:$0xff] %v1430_v4  ;;  %v1380_v43 = vadd.f32 %v2538_v26, %v1341_v10  ;;  %v1356_v19 = vmul.f32 %v2532_v46, %v1317_v16  ;;  %v1192_v32 = vpop.xlane.xlu1 %1191  ;;  %v1813_v10 = vld [vmem:[%s1905_s16 + $0x58] sm:$0xff] }
 0x262   : > { %v1411_v11 = vadd.f32 %v1808_v15, %v1379_v7  ;;  %v1318_v17 = vmul.f32 %v1763_v53, %v2443_v62  ;;  %v1259_v24 = vadd.f32 1e-05, %v1227_v50  ;;  %v1228_v6 = vmul.f32 0.0078125, %v1192_v32 }
 0x263   : > { %v1765_v18 = vpop.eup %1764  ;;  %v1412_v14 = vadd.f32 %v1809_v27, %v1380_v43  ;;  %v1395_v33 = vadd.f32 %v2538_v26, %v1356_v19  ;;  %v1154_v59 = vpop.xlane.xlu0 %1153 }
 0x264   : > { %1443 = vst [vmem:[%s2547_s17 + $0x20] sm:$0xff] %v1411_v11  ;;  %v1357_v60 = vmul.f32 %v2532_v46, %v1318_v17  ;;  %v1307_v5 = vmul.f32 %v1765_v18, %v2450_v29  ;;  %1768 = vrsqrt.f32 %v1259_v24  ;;  %v1260_v21 = vadd.f32 1e-05, %v1228_v6 }
 0x265   : > { %1444 = vst [vmem:[%s2547_s17 + $0x28] sm:$0xff] %v1412_v14  ;;  %v1427_v62 = vadd.f32 %v1810_v34, %v1395_v33  ;;  %v1209_v23 = vmul.f32 0.0078125, %v1154_v59  ;;  %v1156_v28 = vpop.xlane.xlu1 %1155 }
 0x266   : > { %v1767_v45 = vpop.eup %1766  ;;  %v1396_v22 = vadd.f32 %v2538_v26, %v1357_v60  ;;  %v1346_v61 = vmul.f32 %v2532_v46, %v1307_v5  ;;  %1770 = vrsqrt.f32 %v1260_v21  ;;  %v1210_v47 = vmul.f32 0.0078125, %v1156_v28  ;;  %v1814_v21 = vld [vmem:[%s1905_s16 + $0xd0] sm:$0xff] }
 0x267   : > { %1459 = vst [vmem:[%s2547_s17 + $0xa0] sm:$0xff] %v1427_v62  ;;  %v1308_v29 = vmul.f32 %v1767_v45, %v2453_v12  ;;  %v1241_v30 = vadd.f32 1e-05, %v1209_v23  ;;  %v1186_v25 = vpop.xlane.xlu0 %1185 }
 0x268   : > { %v1428_v49 = vadd.f32 %v1811_v8, %v1396_v22  ;;  %v1385_v0 = vadd.f32 %v2538_v26, %v1346_v61  ;;  %v1242_v35 = vadd.f32 1e-05, %v1210_v47  ;;  %v1225_v54 = vmul.f32 0.0078125, %v1186_v25  ;;  %v1815_v22 = vld [vmem:[%s1905_s16 + $0xd8] sm:$0xff] }
 0x269   : > { %v1347_v1 = vmul.f32 %v2532_v46, %v1308_v29  ;;  %1772 = vrsqrt.f32 %v1241_v30  ;;  %v1188_v3 = vpop.xlane.xlu1 %1187 }
 0x26a   : > { %1460 = vst [vmem:[%s2547_s17 + $0xa8] sm:$0xff] %v1428_v49  ;;  %v1417_v37 = vadd.f32 %v1812_v55, %v1385_v0  ;;  %1774 = vrsqrt.f32 %v1242_v35  ;;  %v1257_v12 = vadd.f32 1e-05, %v1225_v54  ;;  %v1226_v40 = vmul.f32 0.0078125, %v1188_v3 }
 0x26b   : > { %v1386_v56 = vadd.f32 %v2538_v26, %v1347_v1  ;;  %v1166_v51 = vpop.xlane.xlu0 %1165  ;;  %v1816_v1 = vld [vmem:[%s1905_s16 + $0x40] sm:$0xff] }
 0x26c   : > { %1449 = vst [vmem:[%s2547_s17 + $0x50] sm:$0xff] %v1417_v37  ;;  %1776 = vrsqrt.f32 %v1257_v12  ;;  %v1258_v44 = vadd.f32 1e-05, %v1226_v40  ;;  %v1215_v4 = vmul.f32 0.0078125, %v1166_v51  ;;  %v1817_v37 = vld [vmem:[%s1905_s16 + $0x48] sm:$0xff] }
 0x26d   : > { %v1418_v16 = vadd.f32 %v1813_v10, %v1386_v56  ;;  %v1168_v31 = vpop.xlane.xlu1 %1167 }
 0x26e   : > { %v1769_v7 = vpop.eup %1768  ;;  %1778 = vrsqrt.f32 %v1258_v44  ;;  %v1247_v50 = vadd.f32 1e-05, %v1215_v4  ;;  %v1216_v53 = vmul.f32 0.0078125, %v1168_v31 }
 0x26f   : > { %1450 = vst [vmem:[%s2547_s17 + $0x58] sm:$0xff] %v1418_v16  ;;  %v1323_v43 = vmul.f32 %v1769_v7, %v2460_v52  ;;  %v1162_v19 = vpop.xlane.xlu0 %1161  ;;  %v1818_v16 = vld [vmem:[%s1905_s16 + $0xc0] sm:$0xff] }
 0x270   : > { %v1771_v32 = vpop.eup %1770  ;;  %1780 = vrsqrt.f32 %v1247_v50  ;;  %v1248_v15 = vadd.f32 1e-05, %v1216_v53  ;;  %v1213_v11 = vmul.f32 0.0078125, %v1162_v19 }
 0x271   : > { %v1362_v17 = vmul.f32 %v2532_v46, %v1323_v43  ;;  %v1324_v24 = vmul.f32 %v1771_v32, %v2463_v41  ;;  %v1164_v6 = vpop.xlane.xlu1 %1163  ;;  %v1819_v32 = vld [vmem:[%s1905_s16 + $0xc8] sm:$0xff] }
 0x272   : > { %1782 = vrsqrt.f32 %v1248_v15  ;;  %v1245_v18 = vadd.f32 1e-05, %v1213_v11  ;;  %v1214_v27 = vmul.f32 0.0078125, %v1164_v6 }
 0x273   : > { %v1773_v14 = vpop.eup %1772  ;;  %v1401_v33 = vadd.f32 %v2538_v26, %v1362_v17  ;;  %v1363_v52 = vmul.f32 %v2532_v46, %v1324_v24 }
 0x274   : > { %v1775_v59 = vpop.eup %1774  ;;  %v1305_v60 = vmul.f32 %v1773_v14, %v2468_v39  ;;  %1784 = vrsqrt.f32 %v1245_v18  ;;  %v1246_v5 = vadd.f32 1e-05, %v1214_v27  ;;  %v1820_v18 = vld [vmem:[%s1905_s16 + $0x70] sm:$0xff] }
 0x275   : > { %v1433_v34 = vadd.f32 %v1814_v21, %v1401_v33  ;;  %v1402_v41 = vadd.f32 %v2538_v26, %v1363_v52  ;;  %v1306_v62 = vmul.f32 %v1775_v59, %v2473_v20  ;;  %v1822_v21 = vld [vmem:[%s1905_s16 + $0x60] sm:$0xff] }
 0x276   : > { %v1777_v23 = vpop.eup %1776  ;;  %v1344_v28 = vmul.f32 %v2532_v46, %v1305_v60  ;;  %1786 = vrsqrt.f32 %v1246_v5  ;;  %v1194_v45 = vpop.xlane.xlu0 %1193 }
 0x277   : > { %1465 = vst [vmem:[%s2547_s17 + $0xd0] sm:$0xff] %v1433_v34  ;;  %v1434_v61 = vadd.f32 %v1815_v22, %v1402_v41  ;;  %v1345_v39 = vmul.f32 %v2532_v46, %v1306_v62  ;;  %v1321_v47 = vmul.f32 %v1777_v23, %v2478_v42  ;;  %v1229_v29 = vmul.f32 0.0078125, %v1194_v45  ;;  %v1823_v23 = vld [vmem:[%s1905_s16 + $0x68] sm:$0xff] }
 0x278   : > { %v1779_v30 = vpop.eup %1778  ;;  %v1383_v25 = vadd.f32 %v2538_v26, %v1344_v28  ;;  %v1196_v8 = vpop.xlane.xlu1 %1195 }
 0x279   : > { %1466 = vst [vmem:[%s2547_s17 + $0xd8] sm:$0xff] %v1434_v61  ;;  %v1384_v20 = vadd.f32 %v2538_v26, %v1345_v39  ;;  %v1360_v49 = vmul.f32 %v2532_v46, %v1321_v47  ;;  %v1322_v0 = vmul.f32 %v1779_v30, %v2483_v48  ;;  %v1261_v35 = vadd.f32 1e-05, %v1229_v29 }
 0x27a   : > { %v1781_v54 = vpop.eup %1780  ;;  %v1415_v3 = vadd.f32 %v1816_v1, %v1383_v25  ;;  %v1230_v42 = vmul.f32 0.0078125, %v1196_v8  ;;  %v1198_v55 = vpop.xlane.xlu0 %1197 }
 0x27b   : > { %v1416_v12 = vadd.f32 %v1817_v37, %v1384_v20  ;;  %v1399_v40 = vadd.f32 %v2538_v26, %v1360_v49  ;;  %v1361_v56 = vmul.f32 %v2532_v46, %v1322_v0  ;;  %v1311_v51 = vmul.f32 %v1781_v54, %v2488_v57  ;;  %v1825_v0 = vld [vmem:[%s1905_s16 + $0xe8] sm:$0xff] }
 0x27c   : > { %v1783_v44 = vpop.eup %1782  ;;  %1447 = vst [vmem:[%s2547_s17 + $0x40] sm:$0xff] %v1415_v3  ;;  %1788 = vrsqrt.f32 %v1261_v35  ;;  %v1262_v48 = vadd.f32 1e-05, %v1230_v42  ;;  %v1231_v4 = vmul.f32 0.0078125, %v1198_v55  ;;  %v1200_v10 = vpop.xlane.xlu1 %1199  ;;  %v1827_v55 = vld [vmem:[%s1905_s16 + $0xf8] sm:$0xff] }
 0x27d   : > { %1448 = vst [vmem:[%s2547_s17 + $0x48] sm:$0xff] %v1416_v12  ;;  %v1431_v31 = vadd.f32 %v1818_v16, %v1399_v40  ;;  %v1400_v7 = vadd.f32 %v2538_v26, %v1361_v56  ;;  %v1350_v50 = vmul.f32 %v2532_v46, %v1311_v51  ;;  %v1312_v53 = vmul.f32 %v1783_v44, %v2493_v63 }
 0x27e   : > { %v1785_v57 = vpop.eup %1784  ;;  %1790 = vrsqrt.f32 %v1262_v48  ;;  %v1263_v43 = vadd.f32 1e-05, %v1231_v4  ;;  %v1232_v19 = vmul.f32 0.0078125, %v1200_v10 }
 0x27f   : > { %1463 = vst [vmem:[%s2547_s17 + $0xc0] sm:$0xff] %v1431_v31  ;;  %v1432_v15 = vadd.f32 %v1819_v32, %v1400_v7  ;;  %v1389_v11 = vadd.f32 %v2538_v26, %v1350_v50  ;;  %v1351_v17 = vmul.f32 %v2532_v46, %v1312_v53  ;;  %v1309_v24 = vmul.f32 %v1785_v57, %v2498_v2  ;;  %v1821_v2 = vld [vmem:[%s1905_s16 + $0x78] sm:$0xff] }
 0x280   : > { %v1787_v6 = vpop.eup %1786  ;;  %1792 = vrsqrt.f32 %v1263_v43  ;;  %v1264_v63 = vadd.f32 1e-05, %v1232_v19 }
 0x281   : > { %1464 = vst [vmem:[%s2547_s17 + $0xc8] sm:$0xff] %v1432_v15  ;;  %v1421_v27 = vadd.f32 %v1820_v18, %v1389_v11  ;;  %v1390_v14 = vadd.f32 %v2538_v26, %v1351_v17  ;;  %v1348_v33 = vmul.f32 %v2532_v46, %v1309_v24  ;;  %v1310_v52 = vmul.f32 %v1787_v6, %v2503_v58 }
 0x282   : > { %1794 = vrsqrt.f32 %v1264_v63 }
 0x283   : > { %1453 = vst [vmem:[%s2547_s17 + $0x70] sm:$0xff] %v1421_v27  ;;  %v1422_v59 = vadd.f32 %v1821_v2, %v1390_v14  ;;  %v1387_v60 = vadd.f32 %v2538_v26, %v1348_v33  ;;  %v1349_v5 = vmul.f32 %v2532_v46, %v1310_v52 }
 0x285   : > { %1454 = vst [vmem:[%s2547_s17 + $0x78] sm:$0xff] %v1422_v59  ;;  %v1419_v34 = vadd.f32 %v1822_v21, %v1387_v60  ;;  %v1388_v41 = vadd.f32 %v2538_v26, %v1349_v5 }
 0x286   : > { %v1789_v62 = vpop.eup %1788 }
 0x287   : > { %1451 = vst [vmem:[%s2547_s17 + $0x60] sm:$0xff] %v1419_v34  ;;  %v1420_v28 = vadd.f32 %v1823_v23, %v1388_v41  ;;  %v1325_v58 = vmul.f32 %v1789_v62, %v2510_v36  ;;  %v1824_v36 = vld [vmem:[%s1905_s16 + $0xe0] sm:$0xff] }
 0x288   : > { %v1791_v45 = vpop.eup %1790 }
 0x289   : > { %1452 = vst [vmem:[%s2547_s17 + $0x68] sm:$0xff] %v1420_v28  ;;  %v1364_v22 = vmul.f32 %v2532_v46, %v1325_v58  ;;  %v1326_v61 = vmul.f32 %v1791_v45, %v2513_v9 }
 0x28a   : > { %v1793_v39 = vpop.eup %1792 }
 0x28b   : > { %v1403_v47 = vadd.f32 %v2538_v26, %v1364_v22  ;;  %v1365_v29 = vmul.f32 %v2532_v46, %v1326_v61  ;;  %v1327_v30 = vmul.f32 %v1793_v39, %v2518_v38  ;;  %v1826_v38 = vld [vmem:[%s1905_s16 + $0xf0] sm:$0xff] }
 0x28c   : > { %v1795_v25 = vpop.eup %1794 }
 0x28d   : > { %v1435_v8 = vadd.f32 %v1824_v36, %v1403_v47  ;;  %v1404_v20 = vadd.f32 %v2538_v26, %v1365_v29  ;;  %v1366_v49 = vmul.f32 %v2532_v46, %v1327_v30  ;;  %v1328_v9 = vmul.f32 %v1795_v25, %v2523_v13 }
 0x28f   : > { %1467 = vst [vmem:[%s2547_s17 + $0xe0] sm:$0xff] %v1435_v8  ;;  %v1436_v35 = vadd.f32 %v1825_v0, %v1404_v20  ;;  %v1405_v54 = vadd.f32 %v2538_v26, %v1366_v49  ;;  %v1367_v1 = vmul.f32 %v2532_v46, %v1328_v9 }
 0x291   : > { %1468 = vst [vmem:[%s2547_s17 + $0xe8] sm:$0xff] %v1436_v35  ;;  %v1437_v3 = vadd.f32 %v1826_v38, %v1405_v54  ;;  %v1406_v42 = vadd.f32 %v2538_v26, %v1367_v1 }
 0x293   : > { %1469 = vst [vmem:[%s2547_s17 + $0xf0] sm:$0xff] %v1437_v3  ;;  %v1438_v37 = vadd.f32 %v1827_v55, %v1406_v42 }
 0x295   : > { %1470 = vst [vmem:[%s2547_s17 + $0xf8] sm:$0xff] %v1438_v37 }
 0x296 PF: > { %s17_s24 = sadd.s32 1, %s1834_s24  }
 0x297   : > { %p14_p4 = scmp.ge.s32.totalorder %s17_s24, 4  }
 0x299   :  { %16 = sbr.rel (!%p14_p4) target bundleno = 1 (0x1), region = 81 }

</bundles_post_ra>
